<compile_context>
chip_gen: v6e
topology: v6e:2x2x1
jax: 0.10.0
libtpu: 0.0.40
codegen_flags: <defaults>
</compile_context>

<pallas_src>
import functools

import jax
import jax.numpy as jnp
from jax import lax
from jax.experimental import pallas as pl
from jax.experimental.pallas import tpu as pltpu

n_embedding = 384   # module constant
block_size = 256    # module constant (tril buffer size); only T <= block_size matters
_LANE = 128         # TPU lane width; head dim padded to a multiple of this


def _head_kernel(x_ref, w_ref, o_ref, mask_ref, *, h_padded, approx_recip):
    # x_ref: (Bb, T, C) compute dtype; w_ref: (C, 3*Hp) fused [Wk | Wq*scale | Wv];
    # o_ref: (Bb, T, Hp); mask_ref: (T, T) f32 scratch holding the causal bias.
    Bb, T, C = x_ref.shape
    Hp = h_padded
    cdt = x_ref.dtype  # MXU operand dtype (bf16 recommended)

    # Causal additive bias is grid-invariant: build it once on step 0 and
    # reuse it for every subsequent grid step (scratch persists across steps).
    @pl.when(pl.program_id(0) == 0)
    def _():
        row = lax.broadcasted_iota(jnp.int32, (T, T), 0)
        col = lax.broadcasted_iota(jnp.int32, (T, T), 1)
        # Large finite negative (not -inf): exp underflows to exactly 0 and
        # avoids (-inf) - (-inf) NaN fragility in the max-subtraction.
        mask_ref[...] = jnp.where(col <= row, 0.0, -1e30).astype(jnp.float32)

    # Fused QKV projection on the flattened (Bb*T, C) LHS (M >= 256 fills the
    # v6e/v7x MXU rows); f32 accumulation on the MXU.
    x2d = x_ref[...].reshape(Bb * T, C)
    qkv = jnp.dot(x2d, w_ref[...], preferred_element_type=jnp.float32)
    qkv = qkv.reshape(Bb, T, 3 * Hp)

    # Lane-tile-aligned slices (Hp is a multiple of 128).  The 1/sqrt(H)
    # attention scale is already folded into the Wq columns at prep time.
    k = qkv[..., 0 * Hp:1 * Hp].astype(cdt)
    q = qkv[..., 1 * Hp:2 * Hp].astype(cdt)
    v = qkv[..., 2 * Hp:3 * Hp].astype(cdt)

    # scores = q @ k^T: contract the (zero-padded) head dim directly — padded
    # columns are zero, so they contribute 0.
    wei = jnp.einsum('bqd,bkd->bqk', q, k,
                     preferred_element_type=jnp.float32)        # (Bb, T, T) f32
    wei = wei + mask_ref[...]                                    # broadcast over Bb

    # Softmax with deferred normalization: keep probabilities unnormalized
    # through the value matmul and fold 1/denom into the epilogue.
    # Safe because the diagonal is never masked => denom >= exp(0) = 1.
    m = jnp.max(wei, axis=-1, keepdims=True)
    p = jnp.exp(wei - m)                                         # (Bb, T, T) f32
    denom = jnp.sum(p, axis=-1, keepdims=True)                   # (Bb, T, 1)

    # (attention-weight dropout: identity in eval mode)
    # TODO(synk): training-mode dropout would need pltpu.prng_seed /
    # prng_random_bits and cannot reproduce torch's RNG stream anyway.

    acc = jnp.einsum('bqk,bkd->bqd', p.astype(cdt), v,
                     preferred_element_type=jnp.float32)         # (Bb, T, Hp) f32
    out = acc * pl.reciprocal(denom, approx=approx_recip)
    o_ref[...] = out.astype(o_ref.dtype)


def prepare_fused_qkv_weight(w_key, w_query, w_value,
                             compute_dtype=jnp.bfloat16):
    """One-time prep (hoisted out of the per-forward path): fold nn.Linear
    weights (H, C) into a single (C, 3*Hp) transposed, zero-padded slab in the
    MXU compute dtype, with the 1/sqrt(head_size) scale folded into Wq."""
    H, C = w_key.shape
    Hp = ((H + _LANE - 1) // _LANE) * _LANE
    scale = float(H) ** -0.5

    def prep(w, s=1.0):
        wt = (w * s).T                             # (C, H): kernel computes x @ W
        if Hp != H:
            wt = jnp.pad(wt, ((0, 0), (0, Hp - H)))
        return wt

    slab = jnp.concatenate([prep(w_key), prep(w_query, scale), prep(w_value)],
                           axis=1)
    return slab.astype(compute_dtype)


def _pick_batch_block(B, max_bb=8):
    bb = min(B, max_bb)
    while B % bb:
        bb -= 1
    return bb


def head_forward(x, w_qkv_fused, head_size, *, batch_block=None,
                 approx_recip=None):
    """x: (B, T, C); w_qkv_fused: (C, 3*Hp) from prepare_fused_qkv_weight
    (its dtype is the MXU compute dtype).  Returns (B, T, head_size)."""
    B, T, C = x.shape
    three_hp = w_qkv_fused.shape[1]
    Hp = three_hp // 3
    assert C == n_embedding and T <= block_size
    assert T % 8 == 0
    assert Hp % _LANE == 0 and Hp >= head_size

    compute_dtype = w_qkv_fused.dtype
    if approx_recip is None:
        approx_recip = compute_dtype == jnp.bfloat16

    # Cast activations once in the wrapper (halves x DMA bytes for bf16).
    xc = x.astype(compute_dtype)

    Bb = batch_block if batch_block is not None else _pick_batch_block(B)
    assert B % Bb == 0

    kernel = functools.partial(_head_kernel, h_padded=Hp,
                               approx_recip=approx_recip)

    out_padded = pl.pallas_call(
        kernel,
        out_shape=jax.ShapeDtypeStruct((B, T, Hp), x.dtype),
        grid_spec=pltpu.PrefetchScalarGridSpec(
            num_scalar_prefetch=0,
            grid=(B // Bb,),
            in_specs=[
                pl.BlockSpec((Bb, T, C), lambda b: (b, 0, 0)),        # x block
                pl.BlockSpec((C, three_hp), lambda b: (0, 0)),        # resident W
            ],
            out_specs=pl.BlockSpec((Bb, T, Hp), lambda b: (b, 0, 0)),  # lane-dense
            scratch_shapes=[pltpu.VMEM((T, T), jnp.float32)],          # causal bias
        ),
        # "arbitrary": the causal-bias scratch is written on step 0 and reused
        # later, which relies on in-order sequential execution of the axis.
        # TODO(synk): on v7x, shard the batch axis with pltpu.CORE_PARALLEL
        # (and init the bias per-core / per-step) so both TensorCores get work.
        compiler_params=pltpu.CompilerParams(
            dimension_semantics=("arbitrary",)),
    )(xc, w_qkv_fused)

    # TODO(synk): when used inside multi-head attention, fuse all heads into
    # this kernel (weight slab (C, 3*H*num_heads)) so the padded lanes carry
    # real data and this slice disappears.
    return out_padded[..., :head_size]


def _reference(x, w_key, w_query, w_value):
    """Plain-JAX reference mirroring the PyTorch forward (eval mode)."""
    B, T, C = x.shape
    H = w_key.shape[0]
    k = x @ w_key.T
    q = x @ w_query.T
    v = x @ w_value.T
    wei = (q @ jnp.swapaxes(k, -2, -1)) * (H ** -0.5)
    row = jnp.arange(T)[:, None]
    col = jnp.arange(T)[None, :]
    wei = jnp.where(col <= row, wei, -jnp.inf)
    wei = jax.nn.softmax(wei, axis=-1)
    return wei @ v


if __name__ == "__main__":
    key = jax.random.PRNGKey(0)
    B, T, C = 2, 128, n_embedding
    head_size = 64

    kx, kk, kq, kv = jax.random.split(key, 4)
    x = jax.random.normal(kx, (B, T, C), dtype=jnp.float32)
    # nn.Linear(n_embedding, head_size, bias=False) weight shape: (H, C)
    bound = 1.0 / (C ** 0.5)
    w_key = jax.random.uniform(kk, (head_size, C), jnp.float32, -bound, bound)
    w_query = jax.random.uniform(kq, (head_size, C), jnp.float32, -bound, bound)
    w_value = jax.random.uniform(kv, (head_size, C), jnp.float32, -bound, bound)

    ref = _reference(x, w_key, w_query, w_value)

    # Default path: bf16 MXU operands + f32 accumulation (recommended on
    # v5e/v6e/v7x).  Weight prep (fuse + transpose + pad + scale + cast) is
    # hoisted out of the forward.
    w_bf16 = prepare_fused_qkv_weight(w_key, w_query, w_value,
                                      compute_dtype=jnp.bfloat16)
    out = head_forward(x, w_bf16, head_size)
    out = jax.block_until_ready(out)
    assert out.shape == (B, T, head_size)
    assert jnp.allclose(out, ref, atol=5e-2, rtol=5e-2)

    # Opt-in exact-f32 path (exact reciprocal, f32 MXU operands).
    w_f32 = prepare_fused_qkv_weight(w_key, w_query, w_value,
                                     compute_dtype=jnp.float32)
    out_f32 = head_forward(x, w_f32, head_size)
    out_f32 = jax.block_until_ready(out_f32)
    assert out_f32.shape == (B, T, head_size)
    assert jnp.allclose(out_f32, ref, atol=2e-3, rtol=2e-3)

    print("KERNEL_OK")
</pallas_src>

<mosaic_0001>
module attributes {stable_mosaic.version = 11 : i64} {
  func.func @_head_kernel(%arg0: i32, %arg1: memref<2x128x384xbf16, #tpu.memory_space<vmem>>, %arg2: memref<384x384xbf16, #tpu.memory_space<vmem>>, %arg3: memref<2x128x128xf32, #tpu.memory_space<vmem>>, %arg4: memref<128x128xf32, #tpu.memory_space<vmem>>) attributes {dimension_semantics = [#tpu.dimension_semantics<arbitrary>], iteration_bounds = array<i64: 1>, scalar_prefetch = 0 : i64, scratch_operands = 1 : i64, tpu.core_type = #tpu.core_type<tc>, window_params = [{transform_indices = @transform_0, window_bounds = array<i64: 2, 128, 384>}, {pipeline_mode = #tpu.pipeline_mode<synchronous>, transform_indices = @transform_1, window_bounds = array<i64: 384, 384>}, {transform_indices = @transform_2, window_bounds = array<i64: 2, 128, 128>}]} {
    %c0_i32 = arith.constant 0 : i32
    %0 = arith.cmpi eq, %arg0, %c0_i32 : i32
    %1 = arith.extui %0 : i1 to i32
    %c0_i32_0 = arith.constant 0 : i32
    %2 = arith.cmpi ne, %1, %c0_i32_0 : i32
    scf.if %2 {
      %32 = tpu.iota {dimensions = array<i32: 0>} : vector<128x128xi32>
      %33 = tpu.iota {dimensions = array<i32: 1>} : vector<128x128xi32>
      %34 = arith.cmpi sle, %33, %32 : vector<128x128xi32>
      %cst_14 = arith.constant 0.000000e+00 : f32
      %cst_15 = arith.constant -1.000000e+30 : f32
      %35 = vector.broadcast %cst_14 : f32 to vector<128x128xf32>
      %36 = vector.broadcast %cst_15 : f32 to vector<128x128xf32>
      %37 = arith.select %34, %35, %36 : vector<128x128xi1>, vector<128x128xf32>
      %c0_16 = arith.constant 0 : index
      %c0_17 = arith.constant 0 : index
      %38 = vector.load %arg4[%c0_16, %c0_17] : memref<128x128xf32, #tpu.memory_space<vmem>>, vector<128x128xf32>
      tpu.vector_store %arg4[%c0_16, %c0_17], %37 {strides = array<i32>} : memref<128x128xf32, #tpu.memory_space<vmem>>, vector<128x128xf32>,
    } else {
    }
    %c0 = arith.constant 0 : index
    %c0_1 = arith.constant 0 : index
    %c0_2 = arith.constant 0 : index
    %3 = vector.load %arg1[%c0, %c0_1, %c0_2] : memref<2x128x384xbf16, #tpu.memory_space<vmem>>, vector<2x128x384xbf16>
    %4 = vector.shape_cast %3 : vector<2x128x384xbf16> to vector<256x384xbf16>
    %c0_3 = arith.constant 0 : index
    %c0_4 = arith.constant 0 : index
    %5 = vector.load %arg2[%c0_3, %c0_4] : memref<384x384xbf16, #tpu.memory_space<vmem>>, vector<384x384xbf16>
    %cst = arith.constant dense<0.000000e+00> : vector<256x384xf32>
    %6 = tpu.matmul %4, %5, %cst {dimension_numbers = #tpu.dot_dimension_numbers<[1], [0], [0], [1], [0, 0, 1, 1], [], []>} : vector<256x384xbf16>, vector<384x384xbf16>, vector<256x384xf32> -> vector<256x384xf32>
    %7 = vector.shape_cast %6 : vector<256x384xf32> to vector<2x128x384xf32>
    %8 = vector.extract_strided_slice %7 {offsets = [0, 0, 0], sizes = [2, 128, 128], strides = [1, 1, 1]} : vector<2x128x384xf32> to vector<2x128x128xf32>
    %9 = arith.truncf %8 : vector<2x128x128xf32> to vector<2x128x128xbf16>
    %10 = vector.extract_strided_slice %7 {offsets = [0, 0, 128], sizes = [2, 128, 128], strides = [1, 1, 1]} : vector<2x128x384xf32> to vector<2x128x128xf32>
    %11 = arith.truncf %10 : vector<2x128x128xf32> to vector<2x128x128xbf16>
    %12 = vector.extract_strided_slice %7 {offsets = [0, 0, 256], sizes = [2, 128, 128], strides = [1, 1, 1]} : vector<2x128x384xf32> to vector<2x128x128xf32>
    %13 = arith.truncf %12 : vector<2x128x128xf32> to vector<2x128x128xbf16>
    "tpu.trace_start"() <{level = 10 : i32, message = "bqd,bkd->bqk"}> : () -> ()
    %cst_5 = arith.constant dense<0.000000e+00> : vector<2x128x128xf32>
    %14 = tpu.matmul %11, %9, %cst_5 {dimension_numbers = #tpu.dot_dimension_numbers<[2], [2], [1], [1], [0, 0, 0, 1, 1, 1], [0], [0]>} : vector<2x128x128xbf16>, vector<2x128x128xbf16>, vector<2x128x128xf32> -> vector<2x128x128xf32>
    "tpu.trace_stop"() : () -> ()
    %c0_6 = arith.constant 0 : index
    %c0_7 = arith.constant 0 : index
    %15 = vector.load %arg4[%c0_6, %c0_7] : memref<128x128xf32, #tpu.memory_space<vmem>>, vector<128x128xf32>
    %16 = vector.shape_cast %15 : vector<128x128xf32> to vector<1x128x128xf32>
    %17 = vector.broadcast %16 : vector<1x128x128xf32> to vector<2x128x128xf32>
    %18 = arith.addf %14, %17 : vector<2x128x128xf32>
    %cst_8 = arith.constant dense<0xFF800000> : vector<2x128xf32>
    %19 = vector.multi_reduction <maximumf>, %18, %cst_8 [2] : vector<2x128x128xf32> to vector<2x128xf32>
    %20 = vector.shape_cast %19 : vector<2x128xf32> to vector<2x128x1xf32>
    %21 = vector.broadcast %20 : vector<2x128x1xf32> to vector<2x128x128xf32>
    %22 = arith.subf %18, %21 : vector<2x128x128xf32>
    %23 = math.exp %22 : vector<2x128x128xf32>
    %cst_9 = arith.constant dense<0.000000e+00> : vector<2x128xf32>
    %24 = vector.multi_reduction <add>, %23, %cst_9 [2] : vector<2x128x128xf32> to vector<2x128xf32>
    %25 = vector.shape_cast %24 : vector<2x128xf32> to vector<2x128x1xf32>
    %26 = arith.truncf %23 : vector<2x128x128xf32> to vector<2x128x128xbf16>
    "tpu.trace_start"() <{level = 10 : i32, message = "bqk,bkd->bqd"}> : () -> ()
    %cst_10 = arith.constant dense<0.000000e+00> : vector<2x128x128xf32>
    %27 = tpu.matmul %26, %13, %cst_10 {dimension_numbers = #tpu.dot_dimension_numbers<[2], [1], [1], [2], [0, 0, 0, 1, 1, 2], [0], [0]>} : vector<2x128x128xbf16>, vector<2x128x128xbf16>, vector<2x128x128xf32> -> vector<2x128x128xf32>
    "tpu.trace_stop"() : () -> ()
    %28 = tpu.reciprocal %25 {approx = true} : vector<2x128x1xf32> -> vector<2x128x1xf32>
    %29 = vector.broadcast %28 : vector<2x128x1xf32> to vector<2x128x128xf32>
    %30 = arith.mulf %27, %29 : vector<2x128x128xf32>
    %c0_11 = arith.constant 0 : index
    %c0_12 = arith.constant 0 : index
    %c0_13 = arith.constant 0 : index
    %31 = vector.load %arg3[%c0_11, %c0_12, %c0_13] : memref<2x128x128xf32, #tpu.memory_space<vmem>>, vector<2x128x128xf32>
    tpu.vector_store %arg3[%c0_11, %c0_12, %c0_13], %30 {strides = array<i32>} : memref<2x128x128xf32, #tpu.memory_space<vmem>>, vector<2x128x128xf32>,
    return
  }
  func.func @transform_0(%arg0: i32) -> (i32, i32, i32) {
    %c0_i32 = arith.constant 0 : i32
    %c0_i32_0 = arith.constant 0 : i32
    %c0_i32_1 = arith.constant 0 : i32
    return %arg0, %c0_i32, %c0_i32_0 : i32, i32, i32
  }
  func.func @transform_1(%arg0: i32) -> (i32, i32) {
    %c0_i32 = arith.constant 0 : i32
    %c0_i32_0 = arith.constant 0 : i32
    %c0_i32_1 = arith.constant 0 : i32
    return %c0_i32, %c0_i32_0 : i32, i32
  }
  func.func @transform_2(%arg0: i32) -> (i32, i32, i32) {
    %c0_i32 = arith.constant 0 : i32
    %c0_i32_0 = arith.constant 0 : i32
    %c0_i32_1 = arith.constant 0 : i32
    return %arg0, %c0_i32, %c0_i32_0 : i32, i32, i32
  }
}

</mosaic_0001>

<bundles_post_ra>
// kernel: tpu_custom_call.1
= control target key start
LH: loop header
LB: loop body
LE: loop exit
PB: predicated region body
PF: predicated region fallthrough
CT: control target
= control target key end

     0   :  { %7 = vsyncpa [#allocation4], 0  ;;  %s4058_s0 = inlined_call_operand.hbm [shape: bf16[2,128,384], index: 0, kind: input, shape index: {}]   ;;  %s4059_s1 = inlined_call_operand.hbm [shape: bf16[384,384], index: 1, kind: input, shape index: {}]   ;;  %s4060_s2 = inlined_call_operand.hbm [shape: f32[2,128,128], index: 2, kind: output, shape index: {}]  }
   0x1   :  { %8 = vsyncpa [#allocation7], 0 }
   0x2   :  { %9 = vsyncpa [#allocation5], 0  ;;  %s3301_s9 = smov [#allocation3]  }
   0x3   :  { %s15_s10 = sshll.u32 %s3301_s9, 4  ;;  %s16_s10 = int_to_ptr.vmem [resolvable:$true] %s15_s10 }
   0x4   :  { %s3243_s11 = scalar_lea.vmem %s16_s10, 6144  ;;  %p3248_p1 = scmp.lt.s32.totalorder %s16_s10, %s16_s10 }
   0x5   :  { %p3244_p0 = scmp.ne.s32.totalorder %s16_s10, %s3243_s11  ;;  %p3249_p2 = scmp.lt.s32.totalorder %s3243_s11, %s3243_s11 }
   0x7   :  { %p3250_p3 = por %p3249_p2, %p3248_p1 }
   0x9   :  { %p3251_p4 = pnand %p3250_p3, %p3244_p0 }
   0xb   :  { %3254 = shalt.err (!%p3251_p4)
}
   0xc   :  { %s3302_s12 = smov 192   ;;  %s3303_s13 = smov 12  }
   0xd   :  { %21 = dma.hbm_to_vmem [thread:$0]  %s4058_s0, 6144, %s16_s10, [#allocation4], %s3302_s12, %s3302_s12, %s3303_s13  }
   0xe   :  { %s3304_s16 = smov [#allocation6]  }
   0xf   :  { %s27_s17 = sshll.u32 %s3304_s16, 4  ;;  %s28_s17 = int_to_ptr.vmem [resolvable:$true] %s27_s17 }
  0x10   :  { %s3263_s18 = scalar_lea.vmem %s28_s17, 9216  ;;  %p3268_p6 = scmp.lt.s32.totalorder %s28_s17, %s28_s17 }
  0x11   :  { %p3264_p5 = scmp.ne.s32.totalorder %s28_s17, %s3263_s18  ;;  %p3269_p7 = scmp.lt.s32.totalorder %s3263_s18, %s3263_s18 }
  0x13   :  { %p3270_p8 = por %p3269_p7, %p3268_p6 }
  0x15   :  { %p3271_p9 = pnand %p3270_p8, %p3264_p5 }
  0x17   :  { %3274 = shalt.err (!%p3271_p9)
}
  0x18   :  { %33 = dma.hbm_to_vmem [thread:$0]  %s4059_s1, 9216, %s28_s17, [#allocation7], %s3302_s12, %s3302_s12, %s3303_s13  }
  0x19   :  { %3295 = dma.done.wait [#allocation4], 6144  }
  0x1a   :  { %3296 = vsyncadd [#allocation4], 4294961152 }
  0x1b   :  { %3297 = dma.done.wait [#allocation7], 9216  }
  0x1c   :  { %3298 = vsyncadd [#allocation7], 4294958080  ;;  %v3305_v0 = vmov 0   ;;  %v2947_v1 = vld [vmem:[#allocation6 + $0xac] ss:$12 sps:$4 sm:$0xff]   ;;  %s3307_s0 = smov [#allocation8]  }
  0x1d   :  { %1137 = vmatprep.mubr.bf16.mxu1 %v3305_v0  ;;  %v2949_v2 = vld [vmem:[#allocation6 + $0xa8] ss:$12 sps:$4 sm:$0xff]   ;;  %912 = vmatprep.subr.bf16.mxu0 %v2947_v1  ;;  %v2952_v4 = vld [vmem:[#allocation6 + $0x90] ss:$12 sps:$4 sm:$0xff]   ;;  %v2955_v6 = vld [vmem:[#allocation6 + $0x78] ss:$12 sps:$4 sm:$0xff]  }
  0x1e   :  { %v2950_v3 = vld [vmem:[#allocation6 + $0x94] ss:$12 sps:$4 sm:$0xff]   ;;  %913 = vmatpush1.bf16.msra.mxu0 %v2949_v2  ;;  %v2953_v5 = vld [vmem:[#allocation6 + $0x7c] ss:$12 sps:$4 sm:$0xff]   ;;  %v2956_v7 = vld [vmem:[#allocation6 + $0x64] ss:$12 sps:$4 sm:$0xff]  }
  0x1f   :  { %914 = vmatprep.subr.bf16.mxu0 %v2950_v3  ;;  %v2968_v8 = vld [vmem:[#allocation6 + $0x22c] ss:$12 sps:$4 sm:$0xff]   ;;  %v2970_v9 = vld [vmem:[#allocation6 + $0x228] ss:$12 sps:$4 sm:$0xff]   ;;  %v2976_v13 = vld [vmem:[#allocation6 + $0x210] ss:$12 sps:$4 sm:$0xff]  }
  0x20   :  { %v2958_v10 = vld [vmem:[#allocation6 + $0x60] ss:$12 sps:$4 sm:$0xff]   ;;  %1105 = vmatprep.subr.bf16.mxu1 %v2968_v8  ;;  %v2961_v14 = vld [vmem:[#allocation6 + $0x48] ss:$12 sps:$4 sm:$0xff]   ;;  %v2982_v17 = vld [vmem:[#allocation6 + $0x1f8] ss:$12 sps:$4 sm:$0xff]  }
  0x21   :  { %v2959_v11 = vld [vmem:[#allocation6 + $0x4c] ss:$12 sps:$4 sm:$0xff]   ;;  %v2974_v12 = vld [vmem:[#allocation6 + $0x214] ss:$12 sps:$4 sm:$0xff]   ;;  %1106 = vmatpush1.bf16.msra.mxu1 %v2970_v9  ;;  %v2980_v15 = vld [vmem:[#allocation6 + $0x1fc] ss:$12 sps:$4 sm:$0xff]  }
  0x22   :  { %915 = vmatpush1.bf16.msra.mxu0 %v2952_v4  ;;  %1107 = vmatprep.subr.bf16.mxu1 %v2974_v12  ;;  %v2962_v16 = vld [vmem:[#allocation6 + $0x34] ss:$12 sps:$4 sm:$0xff]   ;;  %v2986_v18 = vld [vmem:[#allocation6 + $0x1e4] ss:$12 sps:$4 sm:$0xff]   ;;  %v2965_v20 = vld [vmem:[#allocation6 + $0x1c] ss:$12 sps:$4 sm:$0xff]  }
  0x23   :  { %916 = vmatprep.subr.bf16.mxu0 %v2953_v5  ;;  %v2964_v19 = vld [vmem:[#allocation6 + $0x30] ss:$12 sps:$4 sm:$0xff]   ;;  %v2988_v21 = vld [vmem:[#allocation6 + $0x1e0] ss:$12 sps:$4 sm:$0xff]   ;;  %v2967_v23 = vld [vmem:[#allocation6 + $0x18] ss:$12 sps:$4 sm:$0xff]  }
  0x24   :  { %v2992_v22 = vld [vmem:[#allocation6 + $0x1cc] ss:$12 sps:$4 sm:$0xff]   ;;  %v2971_v24 = vld [vmem:[#allocation6 + $0x4] ss:$12 sps:$4 sm:$0xff]   ;;  %v2994_v25 = vld [vmem:[#allocation6 + $0x1c8] ss:$12 sps:$4 sm:$0xff]  }
  0x25   :  { %1108 = vmatpush1.bf16.msra.mxu1 %v2976_v13  ;;  %v2998_v26 = vld [vmem:[#allocation6 + $0x1b4] ss:$12 sps:$4 sm:$0xff]   ;;  %v2977_v28 = vld [vmem:[#allocation6 + $0x16c] ss:$12 sps:$4 sm:$0xff]   ;;  %v3000_v29 = vld [vmem:[#allocation6 + $0x1b0] ss:$12 sps:$4 sm:$0xff]  }
  0x26   :  { %917 = vmatpush1.bf16.msra.mxu0 %v2955_v6  ;;  %1109 = vmatprep.subr.bf16.mxu1 %v2980_v15  ;;  %v2973_v27 = vld [vmem:[#allocation6] ss:$12 sps:$4 sm:$0xff]   ;;  %v3004_v30 = vld [vmem:[#allocation6 + $0x19c] ss:$12 sps:$4 sm:$0xff]   ;;  %v3006_v33 = vld [vmem:[#allocation6 + $0x198] ss:$12 sps:$4 sm:$0xff]  }
  0x27   :  { %918 = vmatprep.subr.bf16.mxu0 %v2956_v7  ;;  %v2979_v31 = vld [vmem:[#allocation6 + $0x168] ss:$12 sps:$4 sm:$0xff]   ;;  %v3010_v34 = vld [vmem:[#allocation6 + $0x184] ss:$12 sps:$4 sm:$0xff]   ;;  %v3012_v38 = vld [vmem:[#allocation6 + $0x180] ss:$12 sps:$4 sm:$0xff]  }
  0x28   :  { %v2983_v32 = vld [vmem:[#allocation6 + $0x154] ss:$12 sps:$4 sm:$0xff]   ;;  %v3332_v35 = vld [vmem:[#allocation3 + $0x4] ss:$12 sps:$4 sm:$0xff]   ;;  %v2989_v37 = vld [vmem:[#allocation6 + $0x13c] ss:$12 sps:$4 sm:$0xff]  }
  0x29   :  { %1110 = vmatpush1.bf16.msra.mxu1 %v2982_v17  ;;  %v2985_v36 = vld [vmem:[#allocation6 + $0x150] ss:$12 sps:$4 sm:$0xff]   ;;  %944 = vmatprep.mubr.bf16.mxu0 %v3332_v35  ;;  %v2991_v39 = vld [vmem:[#allocation6 + $0x138] ss:$12 sps:$4 sm:$0xff]   ;;  %v3335_v41 = vld [vmem:[#allocation3 + $0x8] ss:$12 sps:$4 sm:$0xff]  }
  0x2a   :  { %919 = vmatpush1.bf16.msra.mxu0 %v2958_v10  ;;  %1111 = vmatprep.subr.bf16.mxu1 %v2986_v18  ;;  %v2995_v40 = vld [vmem:[#allocation6 + $0x124] ss:$12 sps:$4 sm:$0xff]   ;;  %v2997_v42 = vld [vmem:[#allocation6 + $0x120] ss:$12 sps:$4 sm:$0xff]   ;;  %v3003_v44 = vld [vmem:[#allocation6 + $0x108] ss:$12 sps:$4 sm:$0xff]  }
  0x2b   :  { %920 = vmatprep.subr.bf16.mxu0 %v2959_v11  ;;  %v3001_v43 = vld [vmem:[#allocation6 + $0x10c] ss:$12 sps:$4 sm:$0xff]   ;;  %v3007_v45 = vld [vmem:[#allocation6 + $0xf4] ss:$12 sps:$4 sm:$0xff]   ;;  %v3009_v47 = vld [vmem:[#allocation6 + $0xf0] ss:$12 sps:$4 sm:$0xff]  }
  0x2c   :  { %v3339_v46 = vld [vmem:[#allocation3 + $0x20] ss:$12 sps:$4 sm:$0xff]   ;;  %v3013_v48 = vld [vmem:[#allocation6 + $0xdc] ss:$12 sps:$4 sm:$0xff]   ;;  %v3015_v49 = vld [vmem:[#allocation6 + $0xd8] ss:$12 sps:$4 sm:$0xff]  }
  0x2d   :  { %1112 = vmatpush1.bf16.msra.mxu1 %v2988_v21  ;;  %v3017_v50 = vld [vmem:[#allocation6 + $0xc4] ss:$12 sps:$4 sm:$0xff]   ;;  %v3019_v52 = vld [vmem:[#allocation6 + $0xc0] ss:$12 sps:$4 sm:$0xff]   ;;  %v3349_v54 = vld [vmem:[#allocation3 + $0x1c] ss:$12 sps:$4 sm:$0xff]  }
  0x2e   :  { %921 = vmatpush1.bf16.msra.mxu0 %v2961_v14  ;;  %1113 = vmatprep.subr.bf16.mxu1 %v2992_v22  ;;  %v3343_v51 = vld [vmem:[#allocation3 + $0x38] ss:$12 sps:$4 sm:$0xff]   ;;  %v3347_v53 = vld [vmem:[#allocation3] ss:$12 sps:$4 sm:$0xff]   ;;  %v3351_v55 = vld [vmem:[#allocation3 + $0x50] ss:$12 sps:$4 sm:$0xff]  }
  0x2f   :  { %922 = vmatprep.subr.bf16.mxu0 %v2962_v16  ;;  %v3355_v56 = vld [vmem:[#allocation3 + $0x18] ss:$12 sps:$4 sm:$0xff]   ;;  %v3080_v57 = vld [vmem:[#allocation6 + $0x170] ss:$12 sps:$4 sm:$0xff]   ;;  %v3358_v58 = vld [vmem:[#allocation3 + $0x34] ss:$12 sps:$4 sm:$0xff]  }
  0x30   :  { %v3081_v59 = vld [vmem:[#allocation6 + $0x230] ss:$12 sps:$4 sm:$0xff]   ;;  %v3361_v60 = vld [vmem:[#allocation3 + $0x68] ss:$12 sps:$4 sm:$0xff]   ;;  %v3083_v62 = vld [vmem:[#allocation6 + $0x158] ss:$12 sps:$4 sm:$0xff]  }
  0x31   :  { %1114 = vmatpush1.bf16.msra.mxu1 %v2994_v25  ;;  %v3082_v61 = vld [vmem:[#allocation6 + $0xb0] ss:$12 sps:$4 sm:$0xff]   ;;  %v3084_v63 = vld [vmem:[#allocation6 + $0x218] ss:$12 sps:$4 sm:$0xff]   ;;  %v3089_v3 = vld [vmem:[#allocation6 + $0x140] ss:$12 sps:$4 sm:$0xff]  }
  0x32   :  { %923 = vmatpush1.bf16.msra.mxu0 %v2964_v19  ;;  %1115 = vmatprep.subr.bf16.mxu1 %v2998_v26  ;;  %v3087_v1 = vld [vmem:[#allocation6 + $0x98] ss:$12 sps:$4 sm:$0xff]   ;;  %v3365_v2 = vld [vmem:[#allocation3 + $0x30] ss:$12 sps:$4 sm:$0xff]   ;;  %v3090_v5 = vld [vmem:[#allocation6 + $0x200] ss:$12 sps:$4 sm:$0xff]  }
  0x33   :  { %924 = vmatprep.subr.bf16.mxu0 %v2965_v20  ;;  %v3368_v4 = vld [vmem:[#allocation3 + $0x4c] ss:$12 sps:$4 sm:$0xff]   ;;  %v3092_v8 = vld [vmem:[#allocation6 + $0x128] ss:$12 sps:$4 sm:$0xff]   ;;  %v3095_v11 = vld [vmem:[#allocation6 + $0x110] ss:$12 sps:$4 sm:$0xff]  }
  0x34   :  { %v3371_v6 = vld [vmem:[#allocation3 + $0x80] ss:$12 sps:$4 sm:$0xff]   ;;  %v3093_v9 = vld [vmem:[#allocation6 + $0x1e8] ss:$12 sps:$4 sm:$0xff]   ;;  %v3096_v12 = vld [vmem:[#allocation6 + $0x1d0] ss:$12 sps:$4 sm:$0xff]  }
  0x35   :  { %1116 = vmatpush1.bf16.msra.mxu1 %v3000_v29  ;;  %v3091_v7 = vld [vmem:[#allocation6 + $0x80] ss:$12 sps:$4 sm:$0xff]   ;;  %v3094_v10 = vld [vmem:[#allocation6 + $0x68] ss:$12 sps:$4 sm:$0xff]   ;;  %v3097_v14 = vld [vmem:[#allocation6 + $0x50] ss:$12 sps:$4 sm:$0xff]  }
  0x36   :  { %925 = vmatpush1.bf16.msra.mxu0 %v2967_v23  ;;  %1117 = vmatprep.subr.bf16.mxu1 %v3004_v30  ;;  %v3375_v13 = vld [vmem:[#allocation3 + $0x48] ss:$12 sps:$4 sm:$0xff]   ;;  %v3378_v15 = vld [vmem:[#allocation3 + $0x64] ss:$12 sps:$4 sm:$0xff]   ;;  %v3101_v20 = vld [vmem:[#allocation6 + $0xe0] ss:$12 sps:$4 sm:$0xff]  }
  0x37   :  { %926 = vmatprep.subr.bf16.mxu0 %v2971_v24  ;;  %v3098_v16 = vld [vmem:[#allocation6 + $0xf8] ss:$12 sps:$4 sm:$0xff]   ;;  %v3102_v21 = vld [vmem:[#allocation6 + $0x1a0] ss:$12 sps:$4 sm:$0xff]   ;;  %v3105_v23 = vld [vmem:[#allocation6 + $0x188] ss:$12 sps:$4 sm:$0xff]  }
  0x38   :  { %v3099_v17 = vld [vmem:[#allocation6 + $0x1b8] ss:$12 sps:$4 sm:$0xff]   ;;  %v3103_v22 = vld [vmem:[#allocation6 + $0x20] ss:$12 sps:$4 sm:$0xff]   ;;  %v3104_v25 = vld [vmem:[#allocation6 + $0xc8] ss:$12 sps:$4 sm:$0xff]  }
  0x39   :  { %1118 = vmatpush1.bf16.msra.mxu1 %v3006_v33  ;;  %v3381_v18 = vld [vmem:[#allocation3 + $0x98] ss:$12 sps:$4 sm:$0xff]   ;;  %v3387_v24 = vld [vmem:[#allocation3 + $0x60] ss:$12 sps:$4 sm:$0xff]   ;;  %v3389_v26 = vld [vmem:[#allocation3 + $0x7c] ss:$12 sps:$4 sm:$0xff]  }
  0x3a   :  { %927 = vmatpush1.bf16.msra.mxu0 %v2973_v27  ;;  %1119 = vmatprep.subr.bf16.mxu1 %v3010_v34  ;;  %v3100_v19 = vld [vmem:[#allocation6 + $0x38] ss:$12 sps:$4 sm:$0xff]   ;;  %v3391_v27 = vld [vmem:[#allocation3 + $0xb0] ss:$12 sps:$4 sm:$0xff]   ;;  %v3399_v30 = vld [vmem:[#allocation3 + $0x94] ss:$12 sps:$4 sm:$0xff]  }
  0x3b   :  { %928 = vmatprep.subr.bf16.mxu0 %v2977_v28  ;;  %v3106_v28 = vld [vmem:[#allocation6 + $0x8] ss:$12 sps:$4 sm:$0xff]   ;;  %v3397_v29 = vld [vmem:[#allocation3 + $0x78] ss:$12 sps:$4 sm:$0xff]   ;;  %v3411_v34 = vld [vmem:[#allocation3 + $0xe0] ss:$12 sps:$4 sm:$0xff]  }
  0x3c   :  { %v3409_v33 = vld [vmem:[#allocation3 + $0xac] ss:$12 sps:$4 sm:$0xff]   ;;  %s2413_s1 = sshll.u32 %s3307_s0, 4  ;;  %s2414_s1 = int_to_ptr.vmem [resolvable:$true] %s2413_s1 }
  0x3d   :  { %1120 = vmatpush1.bf16.msra.mxu1 %v3012_v38  ;;  %v3421_v38 = vld [vmem:[#allocation3 + $0xf8] ss:$12 sps:$4 sm:$0xff]   ;;  %s3275_s21 = scalar_lea.vmem %s2414_s1, 4096  ;;  %p3280_p11 = scmp.lt.s32.totalorder %s2414_s1, %s2414_s1 }
  0x3e   :  { %929 = vmatpush2.bf16.msra.mxu0 %v2979_v31  ;;  %2546 = vmatprep.subr.bf16.mxu1 %v3080_v57  ;;  %v3401_v31 = vld [vmem:[#allocation3 + $0xc8] ss:$12 sps:$4 sm:$0xff]   ;;  %v3075_v57 = vld [vmem:[#allocation3 + $0x158] ss:$12 sps:$4 sm:$0xff]   ;;  %p3276_p10 = scmp.ne.s32.totalorder %s2414_s1, %s3275_s21  ;;  %p3281_p12 = scmp.lt.s32.totalorder %s3275_s21, %s3275_s21 }
  0x3f   :  { %930 = vmatprep.subr.bf16.mxu0 %v2983_v32  ;;  %v3407_v32 = vld [vmem:[#allocation3 + $0x90] ss:$12 sps:$4 sm:$0xff]  }
  0x40   :  { %1138 = vmatmul.mubr.bf16.vlgmr.msra.gmra.mxu1 %v3335_v41  ;;  %p3282_p13 = por %p3281_p12, %p3280_p11 }
  0x41   :  { %1147 = vmatprep.mubr.bf16.mxu1 %v3305_v0  ;;  %2547 = vmatpush3.bf16.msra.mxu1 %v3082_v61  ;;  %v3466_v61 = vld [vmem:[#allocation3 + $0x13c] ss:$12 sps:$4 sm:$0xff]  }
  0x42   :  { %931 = vmatpush2.bf16.msra.mxu0 %v2985_v36  ;;  %2548 = vmatprep.subr.bf16.mxu1 %v3083_v62  ;;  %v3417_v36 = vld [vmem:[#allocation3 + $0xa8] ss:$12 sps:$4 sm:$0xff]   ;;  %v3079_v62 = vld [vmem:[#allocation3 + $0x170] ss:$12 sps:$4 sm:$0xff]   ;;  %p3283_p0 = pnand %p3282_p13, %p3276_p10 }
  0x43   :  { %932 = vmatprep.subr.bf16.mxu0 %v2989_v37  ;;  %v3419_v37 = vld [vmem:[#allocation3 + $0xc4] ss:$12 sps:$4 sm:$0xff]  }
  0x45   :  { %2549 = vmatpush3.bf16.msra.mxu1 %v3087_v1  ;;  %v3473_v1 = vld [vmem:[#allocation3 + $0x154] ss:$12 sps:$4 sm:$0xff]  }
  0x46   :  { %933 = vmatpush2.bf16.msra.mxu0 %v2991_v39  ;;  %2550 = vmatprep.subr.bf16.mxu1 %v3089_v3  ;;  %v3427_v39 = vld [vmem:[#allocation3 + $0xc0] ss:$12 sps:$4 sm:$0xff]  }
  0x47   :  { %934 = vmatprep.subr.bf16.mxu0 %v2995_v40  ;;  %v3429_v40 = vld [vmem:[#allocation3 + $0xdc] ss:$12 sps:$4 sm:$0xff]   ;;  %v3481_v3 = vld [vmem:[#allocation3 + $0x16c] ss:$12 sps:$4 sm:$0xff]  }
  0x48   :  { %1148 = vmatmul.mubr.bf16.gmra.mxu1 %v3339_v46 }
  0x49   :  { %1157 = vmatprep.mubr.bf16.mxu1 %v3305_v0  ;;  %2551 = vmatpush3.bf16.msra.mxu1 %v3091_v7 }
  0x4a   :  { %935 = vmatpush2.bf16.msra.mxu0 %v2997_v42  ;;  %2552 = vmatprep.subr.bf16.mxu1 %v3092_v8  ;;  %v3431_v42 = vld [vmem:[#allocation3 + $0x110] ss:$12 sps:$4 sm:$0xff]  }
  0x4b   :  { %936 = vmatprep.subr.bf16.mxu0 %v3001_v43  ;;  %v3437_v43 = vld [vmem:[#allocation3 + $0xd8] ss:$12 sps:$4 sm:$0xff]  }
  0x4d   :  { %2553 = vmatpush3.bf16.msra.mxu1 %v3094_v10 }
  0x4e   :  { %937 = vmatpush2.bf16.msra.mxu0 %v3003_v44  ;;  %2554 = vmatprep.subr.bf16.mxu1 %v3095_v11  ;;  %v3439_v44 = vld [vmem:[#allocation3 + $0xf4] ss:$12 sps:$4 sm:$0xff]  }
  0x4f   :  { %938 = vmatprep.subr.bf16.mxu0 %v3007_v45  ;;  %v3441_v45 = vld [vmem:[#allocation3 + $0x128] ss:$12 sps:$4 sm:$0xff]  }
  0x50   :  { %1158 = vmatmul.mubr.bf16.gmra.mxu1 %v3343_v51 }
  0x51   :  { %1167 = vmatprep.mubr.bf16.mxu1 %v3305_v0  ;;  %2555 = vmatpush3.bf16.msra.mxu1 %v3097_v14 }
  0x52   :  { %939 = vmatpush2.bf16.msra.mxu0 %v3009_v47  ;;  %2556 = vmatprep.subr.bf16.mxu1 %v3098_v16  ;;  %v3447_v47 = vld [vmem:[#allocation3 + $0xf0] ss:$12 sps:$4 sm:$0xff]  }
  0x53   :  { %940 = vmatprep.subr.bf16.mxu0 %v3013_v48  ;;  %v3449_v48 = vld [vmem:[#allocation3 + $0x10c] ss:$12 sps:$4 sm:$0xff]  }
  0x55   :  { %2557 = vmatpush3.bf16.msra.mxu1 %v3100_v19 }
  0x56   :  { %941 = vmatpush2.bf16.msra.mxu0 %v3015_v49  ;;  %2558 = vmatprep.subr.bf16.mxu1 %v3101_v20  ;;  %v3451_v49 = vld [vmem:[#allocation3 + $0x140] ss:$12 sps:$4 sm:$0xff]  }
  0x57   :  { %942 = vmatprep.subr.bf16.mxu0 %v3017_v50  ;;  %v3457_v50 = vld [vmem:[#allocation3 + $0x108] ss:$12 sps:$4 sm:$0xff]  }
  0x58   :  { %1168 = vmatmul.mubr.bf16.gmra.mxu1 %v3351_v55 }
  0x59   :  { %1177 = vmatprep.mubr.bf16.mxu1 %v3305_v0  ;;  %2559 = vmatpush3.bf16.msra.mxu1 %v3103_v22 }
  0x5a   :  { %943 = vmatpush2.bf16.msra.mxu0 %v3019_v52  ;;  %2560 = vmatprep.subr.bf16.mxu1 %v3104_v25  ;;  %v3459_v52 = vld [vmem:[#allocation3 + $0x124] ss:$12 sps:$4 sm:$0xff]  }
  0x5b   :  { %2746 = vmatprep.subr.bf16.mxu0 %v3081_v59 }
  0x5d   :  { %945 = vmatmul.mubr.bf16.vlgmr.msra.gmra.mxu0 %v3347_v53  ;;  %2561 = vmatpush3.bf16.msra.mxu1 %v3106_v28 }
  0x5e   :  { %954 = vmatprep.mubr.bf16.mxu0 %v3349_v54  ;;  %2747 = vmatpush3.bf16.msra.mxu0 %v3081_v59  ;;  %v3464_v59 = vld [vmem:[#allocation3 + $0x120] ss:$12 sps:$4 sm:$0xff]  }
  0x5f   :  { %2748 = vmatprep.subr.bf16.mxu0 %v3084_v63 }
  0x60   :  { %1178 = vmatmul.mubr.bf16.gmra.mxu1 %v3361_v60 }
  0x61   :  { %1187 = vmatprep.mubr.bf16.mxu1 %v3305_v0 }
  0x62   :  { %2749 = vmatpush3.bf16.msra.mxu0 %v3084_v63  ;;  %v3471_v63 = vld [vmem:[#allocation3 + $0x138] ss:$12 sps:$4 sm:$0xff]  }
  0x63   :  { %2750 = vmatprep.subr.bf16.mxu0 %v3090_v5 }
  0x65   :  { %955 = vmatmul.mubr.bf16.gmra.mxu0 %v3355_v56 }
  0x66   :  { %964 = vmatprep.mubr.bf16.mxu0 %v3358_v58  ;;  %2751 = vmatpush3.bf16.msra.mxu0 %v3090_v5 }
  0x67   :  { %2752 = vmatprep.subr.bf16.mxu0 %v3093_v9 }
  0x68   :  { %1188 = vmatmul.mubr.bf16.gmra.mxu1 %v3371_v6 }
  0x69   :  { %1197 = vmatprep.mubr.bf16.mxu1 %v3305_v0 }
  0x6a   :  { %2753 = vmatpush3.bf16.msra.mxu0 %v3093_v9 }
  0x6b   :  { %2754 = vmatprep.subr.bf16.mxu0 %v3096_v12 }
  0x6d   :  { %965 = vmatmul.mubr.bf16.gmra.mxu0 %v3365_v2 }
  0x6e   :  { %974 = vmatprep.mubr.bf16.mxu0 %v3368_v4  ;;  %2755 = vmatpush3.bf16.msra.mxu0 %v3096_v12 }
  0x6f   :  { %2756 = vmatprep.subr.bf16.mxu0 %v3099_v17 }
  0x70   :  { %1198 = vmatmul.mubr.bf16.gmra.mxu1 %v3381_v18 }
  0x71   :  { %1207 = vmatprep.mubr.bf16.mxu1 %v3305_v0 }
  0x72   :  { %2757 = vmatpush3.bf16.msra.mxu0 %v3099_v17 }
  0x73   :  { %2758 = vmatprep.subr.bf16.mxu0 %v3102_v21 }
  0x75   :  { %975 = vmatmul.mubr.bf16.gmra.mxu0 %v3375_v13 }
  0x76   :  { %984 = vmatprep.mubr.bf16.mxu0 %v3378_v15  ;;  %2759 = vmatpush3.bf16.msra.mxu0 %v3102_v21 }
  0x77   :  { %2760 = vmatprep.subr.bf16.mxu0 %v3105_v23 }
  0x78   :  { %1208 = vmatmul.mubr.bf16.gmra.mxu1 %v3391_v27 }
  0x79   :  { %1217 = vmatprep.mubr.bf16.mxu1 %v3305_v0 }
  0x7a   :  { %2761 = vmatpush3.bf16.msra.mxu0 %v3105_v23 }
  0x7d   :  { %985 = vmatmul.mubr.bf16.gmra.mxu0 %v3387_v24 }
  0x7e   :  { %994 = vmatprep.mubr.bf16.mxu0 %v3389_v26 }
  0x80   :  { %1218 = vmatmul.mubr.bf16.gmra.mxu1 %v3401_v31 }
  0x81   :  { %1227 = vmatprep.mubr.bf16.mxu1 %v3305_v0 }
  0x85   :  { %995 = vmatmul.mubr.bf16.gmra.mxu0 %v3397_v29 }
  0x86   :  { %1004 = vmatprep.mubr.bf16.mxu0 %v3399_v30 }
  0x88   :  { %1228 = vmatmul.mubr.bf16.gmra.mxu1 %v3411_v34 }
  0x89   :  { %1237 = vmatprep.mubr.bf16.mxu1 %v3305_v0 }
  0x8d   :  { %1005 = vmatmul.mubr.bf16.gmra.mxu0 %v3407_v32 }
  0x8e   :  { %1014 = vmatprep.mubr.bf16.mxu0 %v3409_v33 }
  0x90   :  { %1238 = vmatmul.mubr.bf16.gmra.mxu1 %v3421_v38 }
  0x91   :  { %1247 = vmatprep.mubr.bf16.mxu1 %v3305_v0 }
  0x95   :  { %1015 = vmatmul.mubr.bf16.gmra.mxu0 %v3417_v36 }
  0x96   :  { %1024 = vmatprep.mubr.bf16.mxu0 %v3419_v37 }
  0x98   :  { %1248 = vmatmul.mubr.bf16.gmra.mxu1 %v3431_v42 }
  0x99   :  { %1257 = vmatprep.mubr.bf16.mxu1 %v3305_v0 }
  0x9d   :  { %1025 = vmatmul.mubr.bf16.gmra.mxu0 %v3427_v39 }
  0x9e   :  { %1034 = vmatprep.mubr.bf16.mxu0 %v3429_v40 }
  0xa0   :  { %1258 = vmatmul.mubr.bf16.gmra.mxu1 %v3441_v45 }
  0xa1   :  { %1267 = vmatprep.mubr.bf16.mxu1 %v3305_v0 }
  0xa5   :  { %1035 = vmatmul.mubr.bf16.gmra.mxu0 %v3437_v43 }
  0xa6   :  { %1044 = vmatprep.mubr.bf16.mxu0 %v3439_v44 }
  0xa8   :  { %1268 = vmatmul.mubr.bf16.gmra.mxu1 %v3451_v49 }
  0xa9   :  { %1277 = vmatprep.mubr.bf16.mxu1 %v3305_v0 }
  0xad   :  { %1045 = vmatmul.mubr.bf16.gmra.mxu0 %v3447_v47 }
  0xae   :  { %1054 = vmatprep.mubr.bf16.mxu0 %v3449_v48 }
  0xb0   :  { %1278 = vmatmul.mubr.bf16.gmra.mxu1 %v3075_v57 }
  0xb1   :  { %1287 = vmatprep.mubr.bf16.mxu1 %v3305_v0  ;;  %v3479_v0 = vld [vmem:[#allocation3 + $0x150] ss:$12 sps:$4 sm:$0xff]  }
  0xb5   :  { %1055 = vmatmul.mubr.bf16.gmra.mxu0 %v3457_v50 }
  0xb6   :  { %1064 = vmatprep.mubr.bf16.mxu0 %v3459_v52 }
  0xb8   :  { %1288 = vmatmul.mubr.bf16.gmra.mxu1 %v3079_v62 }
  0xb9   :  { %1330 = vmatprep.mubr.bf16.mxu1 %v3332_v35  ;;  %v3487_v35 = vld [vmem:[#allocation3 + $0x168] ss:$12 sps:$4 sm:$0xff]  }
  0xbd   :  { %1065 = vmatmul.mubr.bf16.gmra.mxu0 %v3464_v59 }
  0xbe   :  { %1074 = vmatprep.mubr.bf16.mxu0 %v3466_v61 }
  0xc0   :  { %1331 = vmatmul.mubr.bf16.vlgmr.msra.gmra.mxu1 %v3347_v53 }
  0xc1   :  { %1338 = vmatprep.mubr.bf16.mxu1 %v3349_v54 }
  0xc5   :  { %1075 = vmatmul.mubr.bf16.gmra.mxu0 %v3471_v63 }
  0xc6   :  { %1084 = vmatprep.mubr.bf16.mxu0 %v3473_v1 }
  0xc8   :  { %1339 = vmatmul.mubr.bf16.gmra.mxu1 %v3355_v56 }
  0xc9   :  { %1346 = vmatprep.mubr.bf16.mxu1 %v3358_v58 }
  0xcd   :  { %1085 = vmatmul.mubr.bf16.gmra.mxu0 %v3479_v0 }
  0xce   :  { %1094 = vmatprep.mubr.bf16.mxu0 %v3481_v3 }
  0xd0   :  { %1347 = vmatmul.mubr.bf16.gmra.mxu1 %v3365_v2 }
  0xd1   :  { %1354 = vmatprep.mubr.bf16.mxu1 %v3368_v4 }
  0xd5   :  { %1095 = vmatmul.mubr.bf16.gmra.mxu0 %v3487_v35 }
  0xd6   :  { %2762 = vmatprep.mubr.bf16.mxu0 %v3335_v41 }
  0xd8   :  { %1355 = vmatmul.mubr.bf16.gmra.mxu1 %v3375_v13 }
  0xd9   :  { %1362 = vmatprep.mubr.bf16.mxu1 %v3378_v15 }
  0xdd   :  { %2763 = vmatmul.mubr.bf16.vlgmr.msra.gmra.mxu0 %v3339_v46 }
  0xde   :  { %2766 = vmatprep.mubr.bf16.mxu0 %v3343_v51 }
  0xe0   :  { %1363 = vmatmul.mubr.bf16.gmra.mxu1 %v3387_v24 }
  0xe1   :  { %1370 = vmatprep.mubr.bf16.mxu1 %v3389_v26 }
  0xe5   :  { %2767 = vmatmul.mubr.bf16.gmra.mxu0 %v3351_v55 }
  0xe6   :  { %2770 = vmatprep.mubr.bf16.mxu0 %v3361_v60 }
  0xe8   :  { %1371 = vmatmul.mubr.bf16.gmra.mxu1 %v3397_v29 }
  0xe9   :  { %1378 = vmatprep.mubr.bf16.mxu1 %v3399_v30 }
  0xed   :  { %2771 = vmatmul.mubr.bf16.gmra.mxu0 %v3371_v6 }
  0xee   :  { %2774 = vmatprep.mubr.bf16.mxu0 %v3381_v18 }
  0xf0   :  { %1379 = vmatmul.mubr.bf16.gmra.mxu1 %v3407_v32 }
  0xf1   :  { %1386 = vmatprep.mubr.bf16.mxu1 %v3409_v33 }
  0xf5   :  { %2775 = vmatmul.mubr.bf16.gmra.mxu0 %v3391_v27 }
  0xf6   :  { %2778 = vmatprep.mubr.bf16.mxu0 %v3401_v31 }
  0xf8   :  { %1387 = vmatmul.mubr.bf16.gmra.mxu1 %v3417_v36 }
  0xf9   :  { %1394 = vmatprep.mubr.bf16.mxu1 %v3419_v37 }
  0xfd   :  { %2779 = vmatmul.mubr.bf16.gmra.mxu0 %v3411_v34 }
  0xfe   :  { %2782 = vmatprep.mubr.bf16.mxu0 %v3421_v38 }
 0x100   :  { %v1139_v41 = vpop.f32.mrf.mxu1  ;;  %1395 = vmatmul.mubr.bf16.gmra.mxu1 %v3427_v39 }
 0x101   :  { %1402 = vmatprep.mubr.bf16.mxu1 %v3429_v40 }
 0x102   :  { %v1141_v46 = vpop.f32.mrf.mxu1 }
 0x104   :  { %v1143_v51 = vpop.f32.mrf.mxu1 }
 0x105   :  { %2783 = vmatmul.mubr.bf16.gmra.mxu0 %v3431_v42 }
 0x106   :  { %2786 = vmatprep.mubr.bf16.mxu0 %v3441_v45  ;;  %v1145_v53 = vpop.f32.mrf.mxu1 }
 0x108   :  { %v1149_v54 = vpop.f32.mrf.mxu1  ;;  %1403 = vmatmul.mubr.bf16.gmra.mxu1 %v3437_v43 }
 0x109   :  { %1410 = vmatprep.mubr.bf16.mxu1 %v3439_v44 }
 0x10a   :  { %v1151_v55 = vpop.f32.mrf.mxu1 }
 0x10c   :  { %v1153_v56 = vpop.f32.mrf.mxu1 }
 0x10d   :  { %2787 = vmatmul.mubr.bf16.gmra.mxu0 %v3451_v49 }
 0x10e   :  { %2790 = vmatprep.mubr.bf16.mxu0 %v3075_v57  ;;  %v1155_v58 = vpop.f32.mrf.mxu1 }
 0x110   :  { %v1159_v60 = vpop.f32.mrf.mxu1  ;;  %1411 = vmatmul.mubr.bf16.gmra.mxu1 %v3447_v47 }
 0x111   :  { %1418 = vmatprep.mubr.bf16.mxu1 %v3449_v48 }
 0x112   :  { %v1161_v2 = vpop.f32.mrf.mxu1 }
 0x114   :  { %v1163_v4 = vpop.f32.mrf.mxu1 }
 0x115   :  { %2791 = vmatmul.mubr.bf16.gmra.mxu0 %v3079_v62 }
 0x116   :  { %v1165_v6 = vpop.f32.mrf.mxu1 }
 0x118   :  { %v1169_v9 = vpop.f32.mrf.mxu1  ;;  %1419 = vmatmul.mubr.bf16.gmra.mxu1 %v3457_v50 }
 0x119   :  { %1426 = vmatprep.mubr.bf16.mxu1 %v3459_v52 }
 0x11a   :  { %v1171_v11 = vpop.f32.mrf.mxu1 }
 0x11c   :  { %v1173_v14 = vpop.f32.mrf.mxu1 }
 0x11d   :  { %v946_v5 = vpop.f32.mrf.mxu0 }
 0x11e   :  { %v1140_v7 = vadd.f32 %v1139_v41, %v946_v5  ;;  %v1175_v19 = vpop.f32.mrf.mxu1 }
 0x11f   :  { %v948_v8 = vpop.f32.mrf.mxu0 }
 0x120   :  { %v1142_v15 = vadd.f32 %v1141_v46, %v948_v8  ;;  %v1179_v23 = vpop.f32.mrf.mxu1  ;;  %1427 = vmatmul.mubr.bf16.gmra.mxu1 %v3464_v59 }
 0x121   :  { %v950_v10 = vpop.f32.mrf.mxu0  ;;  %1434 = vmatprep.mubr.bf16.mxu1 %v3466_v61 }
 0x122   :  { %v1144_v12 = vadd.f32 %v1143_v51, %v950_v10  ;;  %v1181_v26 = vpop.f32.mrf.mxu1 }
 0x123   :  { %v952_v13 = vpop.f32.mrf.mxu0 }
 0x124   :  { %v3524_v16 = vpack.c.bf16 %v1144_v12, %v1140_v7  ;;  %v1146_v17 = vadd.f32 %v1145_v53, %v952_v13  ;;  %v1183_v29 = vpop.f32.mrf.mxu1 }
 0x125   :  { %v956_v18 = vpop.f32.mrf.mxu0 }
 0x126   :  { %v1636_v20 = vpack.c.bf16 %v1146_v17, %v1142_v15  ;;  %v1150_v21 = vadd.f32 %v1149_v54, %v956_v18  ;;  %v3534_v33 = vpop.f32.mrf.mxu1 }
 0x127   :  { %v958_v22 = vpop.f32.mrf.mxu0 }
 0x128   :  { %v3527_v24 = vadd.f32 %v1151_v55, %v958_v22  ;;  %2810 = vmatprep.mubr.bf16.mxu0 %v1636_v20  ;;  %v3538_v38 = vpop.f32.mrf.mxu1  ;;  %1435 = vmatmul.mubr.bf16.gmra.mxu1 %v3471_v63 }
 0x129   :  { %v960_v25 = vpop.f32.mrf.mxu0  ;;  %1442 = vmatprep.mubr.bf16.mxu1 %v3473_v1 }
 0x12a   :  { %v1154_v27 = vadd.f32 %v1153_v56, %v960_v25  ;;  %v1191_v42 = vpop.f32.mrf.mxu1 }
 0x12b   :  { %v962_v28 = vpop.f32.mrf.mxu0 }
 0x12c   :  { %v3530_v30 = vpack.c.bf16 %v1154_v27, %v1150_v21  ;;  %v3532_v31 = vadd.f32 %v1155_v58, %v962_v28  ;;  %v3544_v45 = vpop.f32.mrf.mxu1 }
 0x12d   :  { %v966_v32 = vpop.f32.mrf.mxu0 }
 0x12e   :  { %v1160_v36 = vadd.f32 %v1159_v60, %v966_v32  ;;  %v3550_v50 = vpop.f32.mrf.mxu1 }
 0x12f   :  { %v968_v37 = vpop.f32.mrf.mxu0 }
 0x130   :  { %v3541_v39 = vadd.f32 %v1161_v2, %v968_v37  ;;  %v1199_v59 = vpop.f32.mrf.mxu1  ;;  %1443 = vmatmul.mubr.bf16.gmra.mxu1 %v3479_v0 }
 0x131   :  { %v970_v40 = vpop.f32.mrf.mxu0  ;;  %1450 = vmatprep.mubr.bf16.mxu1 %v3481_v3 }
 0x132   :  { %v1164_v43 = vadd.f32 %v1163_v4, %v970_v40  ;;  %v1201_v63 = vpop.f32.mrf.mxu1 }
 0x133   :  { %v972_v44 = vpop.f32.mrf.mxu0 }
 0x134   :  { %v3546_v47 = vpack.c.bf16 %v1164_v43, %v1160_v36  ;;  %v3548_v48 = vadd.f32 %v1165_v6, %v972_v44  ;;  %v1203_v51 = vpop.f32.mrf.mxu1 }
 0x135   :  { %v976_v49 = vpop.f32.mrf.mxu0 }
 0x136   :  { %v1170_v1 = vadd.f32 %v1169_v9, %v976_v49  ;;  %v1205_v56 = vpop.f32.mrf.mxu1 }
 0x137   :  { %v978_v57 = vpop.f32.mrf.mxu0 }
 0x138   :  { %v3555_v61 = vadd.f32 %v1171_v11, %v978_v57  ;;  %v1209_v60 = vpop.f32.mrf.mxu1  ;;  %1451 = vmatmul.mubr.bf16.gmra.mxu1 %v3487_v35 }
 0x139   :  { %v980_v62 = vpop.f32.mrf.mxu0 }
 0x13a   :  { %v1174_v41 = vadd.f32 %v1173_v14, %v980_v62  ;;  %v1211_v4 = vpop.f32.mrf.mxu1 }
 0x13b   :  { %v982_v46 = vpop.f32.mrf.mxu0 }
 0x13c   :  { %v3558_v53 = vpack.c.bf16 %v1174_v41, %v1170_v1  ;;  %v3560_v54 = vadd.f32 %v1175_v19, %v982_v46  ;;  %v1213_v8 = vpop.f32.mrf.mxu1 }
 0x13d   :  { %v986_v55 = vpop.f32.mrf.mxu0 }
 0x13e   :  { %v1180_v5 = vadd.f32 %v1179_v23, %v986_v55  ;;  %v1215_v11 = vpop.f32.mrf.mxu1 }
 0x13f   :  { %v988_v0 = vpop.f32.mrf.mxu0 }
 0x140   :  { %v3565_v3 = vadd.f32 %v1181_v26, %v988_v0  ;;  %v1219_v13 = vpop.f32.mrf.mxu1 }
 0x141   :  { %v990_v2 = vpop.f32.mrf.mxu0 }
 0x142   :  { %v1184_v6 = vadd.f32 %v1183_v29, %v990_v2  ;;  %v1221_v17 = vpop.f32.mrf.mxu1 }
 0x143   :  { %v3567_v7 = vpop.f32.mrf.mxu0 }
 0x144   :  { %v3569_v9 = vpack.c.bf16 %v1184_v6, %v1180_v5  ;;  %v1223_v18 = vpop.f32.mrf.mxu1 }
 0x145   :  { %v996_v10 = vpop.f32.mrf.mxu0 }
 0x146   :  { %v1225_v20 = vpop.f32.mrf.mxu1 }
 0x147   :  { %v998_v12 = vpop.f32.mrf.mxu0 }
 0x148   :  { %v3571_v14 = vadd.f32 %v1191_v42, %v998_v12  ;;  %v1229_v22 = vpop.f32.mrf.mxu1 }
 0x149   :  { %v1000_v15 = vpop.f32.mrf.mxu0 }
 0x14a   :  { %v1231_v26 = vpop.f32.mrf.mxu1 }
 0x14b   :  { %v3573_v35 = vpop.f32.mrf.mxu0 }
 0x14c   :  { %v1233_v28 = vpop.f32.mrf.mxu1 }
 0x14d   :  { %v1006_v19 = vpop.f32.mrf.mxu0 }
 0x14e   :  { %v1235_v36 = vpop.f32.mrf.mxu1  ;;  %v1200_v46 = vadd.f32 %v1199_v59, %v1006_v19 }
 0x14f   :  { %v1008_v21 = vpop.f32.mrf.mxu0 }
 0x150   :  { %v3575_v23 = vadd.f32 %v1201_v63, %v1008_v21  ;;  %v1239_v42 = vpop.f32.mrf.mxu1 }
 0x151   :  { %v1010_v25 = vpop.f32.mrf.mxu0 }
 0x152   :  { %v1241_v49 = vpop.f32.mrf.mxu1  ;;  %v1204_v57 = vadd.f32 %v1203_v51, %v1010_v25  ;;  %v1190_v25 = vadd.f32 %v3538_v38, %v996_v10 }
 0x153   :  { %v1012_v27 = vpop.f32.mrf.mxu0 }
 0x154   :  { %v3577_v29 = vadd.f32 %v1205_v56, %v1012_v27  ;;  %v1243_v41 = vpop.f32.mrf.mxu1  ;;  %v1626_v5 = vpack.c.bf16 %v1204_v57, %v1200_v46 }
 0x155   :  { %v1016_v32 = vpop.f32.mrf.mxu0 }
 0x156   :  { %v1210_v62 = vadd.f32 %v1209_v60, %v1016_v32  ;;  %v1245_v2 = vpop.f32.mrf.mxu1 }
 0x157   :  { %v1018_v40 = vpop.f32.mrf.mxu0 }
 0x158   :  { %v3581_v43 = vadd.f32 %v1211_v4, %v1018_v40  ;;  %v1249_v21 = vpop.f32.mrf.mxu1 }
 0x159   :  { %v1020_v44 = vpop.f32.mrf.mxu0 }
 0x15a   :  { %v1214_v63 = vadd.f32 %v1213_v8, %v1020_v44  ;;  %v1251_v60 = vpop.f32.mrf.mxu1  ;;  %v1194_v8 = vadd.f32 %v3544_v45, %v1000_v15 }
 0x15b   :  { %v1022_v1 = vpop.f32.mrf.mxu0 }
 0x15c   :  { %v1627_v55 = vpack.c.bf16 %v1214_v63, %v1210_v62  ;;  %v3583_v56 = vadd.f32 %v1215_v11, %v1022_v1  ;;  %v1253_v11 = vpop.f32.mrf.mxu1  ;;  %v1625_v57 = vpack.c.bf16 %v1194_v8, %v1190_v25 }
 0x15d   :  { %v1026_v0 = vpop.f32.mrf.mxu0 }
 0x15e   :  { %v1220_v12 = vadd.f32 %v1219_v13, %v1026_v0  ;;  %2794 = vmatprep.subr.bf16.mxu0 %v1627_v55  ;;  %v1255_v13 = vpop.f32.mrf.mxu1 }
 0x15f   :  { %v1028_v4 = vpop.f32.mrf.mxu0  ;;  %2795 = vmatpush3.bf16.xpose.msra.mxu0 %v1627_v55 }
 0x160   :  { %2796 = vmatprep.subr.bf16.mxu0 %v1626_v5  ;;  %v1222_v27 = vadd.f32 %v1221_v17, %v1028_v4  ;;  %v1259_v46 = vpop.f32.mrf.mxu1 }
 0x161   :  { %v1030_v51 = vpop.f32.mrf.mxu0 }
 0x162   :  { %v1224_v59 = vadd.f32 %v1223_v18, %v1030_v51  ;;  %v1261_v15 = vpop.f32.mrf.mxu1 }
 0x163   :  { %v1032_v19 = vpop.f32.mrf.mxu0 }
 0x164   :  { %v3589_v32 = vpack.c.bf16 %v1224_v59, %v1220_v12  ;;  %v1226_v40 = vadd.f32 %v1225_v20, %v1032_v19  ;;  %v1263_v10 = vpop.f32.mrf.mxu1 }
 0x165   :  { %v1036_v44 = vpop.f32.mrf.mxu0 }
 0x166   :  { %v1644_v62 = vpack.c.bf16 %v1226_v40, %v1222_v27  ;;  %v1230_v63 = vadd.f32 %v1229_v22, %v1036_v44  ;;  %v1265_v12 = vpop.f32.mrf.mxu1 }
 0x167   :  { %v1038_v1 = vpop.f32.mrf.mxu0  ;;  %2797 = vmatpush3.bf16.xpose.msra.mxu0 %v1626_v5 }
 0x168   :  { %v3591_v55 = vadd.f32 %v1231_v26, %v1038_v1  ;;  %2798 = vmatprep.subr.bf16.mxu0 %v1625_v57  ;;  %2842 = vmatprep.mubr.bf16.mxu1 %v1644_v62  ;;  %v3599_v26 = vpop.f32.mrf.mxu1 }
 0x169   :  { %v1040_v45 = vpop.f32.mrf.mxu0 }
 0x16a   :  { %v1234_v18 = vadd.f32 %v1233_v28, %v1040_v45  ;;  %v1271_v8 = vpop.f32.mrf.mxu1 }
 0x16b   :  { %v1042_v38 = vpop.f32.mrf.mxu0 }
 0x16c   :  { %v3593_v17 = vpack.c.bf16 %v1234_v18, %v1230_v63  ;;  %v3595_v20 = vadd.f32 %v1235_v36, %v1042_v38  ;;  %v3604_v36 = vpop.f32.mrf.mxu1 }
 0x16d   :  { %v1046_v0 = vpop.f32.mrf.mxu0 }
 0x16e   :  { %v1240_v5 = vadd.f32 %v1239_v42, %v1046_v0  ;;  %v1275_v42 = vpop.f32.mrf.mxu1 }
 0x16f   :  { %v1048_v4 = vpop.f32.mrf.mxu0  ;;  %2799 = vmatpush3.bf16.xpose.msra.mxu0 %v1625_v57 }
 0x170   :  { %v3601_v51 = vadd.f32 %v1241_v49, %v1048_v4  ;;  %2800 = vmatprep.subr.bf16.mxu0 %v3569_v9  ;;  %v3613_v49 = vpop.f32.mrf.mxu1 }
 0x171   :  { %v1050_v28 = vpop.f32.mrf.mxu0 }
 0x172   :  { %v1244_v59 = vadd.f32 %v1243_v41, %v1050_v28  ;;  %v1281_v63 = vpop.f32.mrf.mxu1 }
 0x173   :  { %v1052_v19 = vpop.f32.mrf.mxu0 }
 0x174   :  { %v3606_v25 = vpack.c.bf16 %v1244_v59, %v1240_v5  ;;  %v3608_v27 = vadd.f32 %v1245_v2, %v1052_v19  ;;  %v1283_v18 = vpop.f32.mrf.mxu1 }
 0x175   :  { %v1056_v40 = vpop.f32.mrf.mxu0 }
 0x176   :  { %v1250_v1 = vadd.f32 %v1249_v21, %v1056_v40  ;;  %v1285_v4 = vpop.f32.mrf.mxu1 }
 0x177   :  { %v1058_v57 = vpop.f32.mrf.mxu0  ;;  %2801 = vmatpush3.bf16.xpose.msra.mxu0 %v3569_v9 }
 0x178   :  { %v3615_v62 = vadd.f32 %v1251_v60, %v1058_v57  ;;  %2802 = vmatprep.subr.bf16.mxu0 %v3558_v53  ;;  %v1289_v60 = vpop.f32.mrf.mxu1 }
 0x179   :  { %v1060_v41 = vpop.f32.mrf.mxu0 }
 0x17a   :  { %v1254_v45 = vadd.f32 %v1253_v11, %v1060_v41  ;;  %v1291_v11 = vpop.f32.mrf.mxu1 }
 0x17b   :  { %v1062_v2 = vpop.f32.mrf.mxu0 }
 0x17c   :  { %v3618_v38 = vpack.c.bf16 %v1254_v45, %v1250_v1  ;;  %v3620_v0 = vadd.f32 %v1255_v13, %v1062_v2  ;;  %v1293_v13 = vpop.f32.mrf.mxu1 }
 0x17d   :  { %v1066_v5 = vpop.f32.mrf.mxu0 }
 0x17e   :  { %v1260_v19 = vadd.f32 %v1259_v46, %v1066_v5  ;;  %v1295_v2 = vpop.f32.mrf.mxu1 }
 0x17f   :  { %v1068_v28 = vpop.f32.mrf.mxu0  ;;  %2803 = vmatpush3.bf16.xpose.msra.mxu0 %v3558_v53 }
 0x180   :  { %v3625_v59 = vadd.f32 %v1261_v15, %v1068_v28  ;;  %2804 = vmatprep.subr.bf16.mxu0 %v3546_v47  ;;  %v2562_v28 = vpop.f32.mrf.mxu1 }
 0x181   :  { %v1070_v21 = vpop.f32.mrf.mxu0 }
 0x182   :  { %v1264_v40 = vadd.f32 %v1263_v10, %v1070_v21  ;;  %v2563_v10 = vpop.f32.mrf.mxu1 }
 0x183   :  { %v1072_v57 = vpop.f32.mrf.mxu0  ;;  %v2564_v5 = vadd.f32 %v2563_v10, %v2562_v28 }
 0x184   :  { %v3628_v41 = vpack.c.bf16 %v1264_v40, %v1260_v19  ;;  %v3630_v1 = vadd.f32 %v1265_v12, %v1072_v57  ;;  %v2565_v12 = vpop.f32.mrf.mxu1 }
 0x185   :  { %v3632_v45 = vpop.f32.mrf.mxu0 }
 0x186   :  { %v2566_v57 = vpop.f32.mrf.mxu1 }
 0x187   :  { %v1078_v15 = vpop.f32.mrf.mxu0  ;;  %2805 = vmatpush3.bf16.xpose.msra.mxu0 %v3546_v47  ;;  %v2567_v44 = vadd.f32 %v2566_v57, %v2565_v12 }
 0x188   :  { %v3637_v9 = vadd.f32 %v1271_v8, %v1078_v15  ;;  %2806 = vmatprep.subr.bf16.mxu0 %v3530_v30  ;;  %v2568_v47 = vpop.f32.mrf.mxu1 }
 0x189   :  { %v1080_v46 = vpop.f32.mrf.mxu0 }
 0x18a   :  { %4066 = vst [vmem:[#allocation12_spill] sm:$0xff] %v3637_v9  ;;  %v2569_v28 = vpop.f32.mrf.mxu1 }
 0x18b   :  { %v1082_v21 = vpop.f32.mrf.mxu0  ;;  %v2570_v10 = vadd.f32 %v2569_v28, %v2568_v47 }
 0x18c   :  { %v3640_v19 = vadd.f32 %v1275_v42, %v1082_v21  ;;  %v2571_v42 = vpop.f32.mrf.mxu1 }
 0x18d   :  { %v1086_v40 = vpop.f32.mrf.mxu0 }
 0x18e   :  { %v2572_v58 = vpop.f32.mrf.mxu1  ;;  %v1280_v9 = vadd.f32 %v3613_v49, %v1086_v40 }
 0x18f   :  { %v1088_v22 = vpop.f32.mrf.mxu0  ;;  %2807 = vmatpush3.bf16.xpose.msra.mxu0 %v3530_v30  ;;  %v2573_v57 = vadd.f32 %v2572_v58, %v2571_v42 }
 0x190   :  { %v3645_v8 = vadd.f32 %v1281_v63, %v1088_v22  ;;  %2808 = vmatprep.subr.bf16.mxu0 %v3524_v16  ;;  %v3653_v30 = vpop.f32.mrf.mxu1 }
 0x191   :  { %v1090_v15 = vpop.f32.mrf.mxu0 }
 0x192   :  { %4067 = vst [vmem:[#allocation13_spill] sm:$0xff] %v3645_v8  ;;  %v3657_v52 = vpop.f32.mrf.mxu1  ;;  %v1284_v47 = vadd.f32 %v1283_v18, %v1090_v15  ;;  %v4071_v18 = vpack.c.bf16 %v3532_v31, %v3527_v24  ;;  %v1274_v24 = vadd.f32 %v3604_v36, %v1080_v46  ;;  %v4073_v36 = vpack.c.bf16 %v3560_v54, %v3555_v61 }
 0x193   :  { %v1092_v6 = vpop.f32.mrf.mxu0 }
 0x194   :  { %v3648_v21 = vadd.f32 %v1285_v4, %v1092_v6  ;;  %v3659_v34 = vpop.f32.mrf.mxu1  ;;  %v1634_v8 = vpack.c.bf16 %v1284_v47, %v1280_v9  ;;  %v1186_v9 = vadd.f32 %v3534_v33, %v3567_v7 }
 0x195   :  { %v1096_v37 = vpop.f32.mrf.mxu0 }
 0x196   :  { %4068 = vst [vmem:[#allocation14_spill] sm:$0xff] %v3648_v21  ;;  %v1290_v28 = vadd.f32 %v1289_v60, %v1096_v37  ;;  %v3664_v42 = vpop.f32.mrf.mxu1  ;;  %v4072_v37 = vpack.c.bf16 %v3548_v48, %v3541_v39  ;;  %v1270_v48 = vadd.f32 %v3599_v26, %v3632_v45 }
 0x197   :  { %v1098_v53 = vpop.f32.mrf.mxu0  ;;  %2809 = vmatpush3.bf16.xpose.msra.mxu0 %v3524_v16 }
 0x198   :  { %v3655_v22 = vadd.f32 %v1291_v11, %v1098_v53  ;;  %v3674_v49 = vpop.f32.mrf.mxu1  ;;  %v1633_v7 = vpack.c.bf16 %v1274_v24, %v1270_v48 }
 0x199   :  { %v1100_v63 = vpop.f32.mrf.mxu0 }
 0x19a   :  { %4069 = vst [vmem:[#allocation15_spill] sm:$0xff] %v3655_v22  ;;  %v1294_v6 = vadd.f32 %v1293_v13, %v1100_v63 }
 0x19b   :  { %v1102_v4 = vpop.f32.mrf.mxu0 }
 0x19c   :  { %v1635_v12 = vpack.c.bf16 %v1294_v6, %v1290_v28  ;;  %v3662_v58 = vadd.f32 %v1295_v2, %v1102_v4  ;;  %v3678_v2 = vpop.f32.mrf.mxu1 }
 0x19d   :  { %v2764_v16 = vpop.f32.mrf.mxu0 }
 0x19e   :  { %4070 = vst [vmem:[#allocation16_spill] sm:$0xff] %v3662_v58  ;;  %2811 = vmatmul.mubr.bf16.vlgmr.msra.gmra.mxu0 %v4071_v18  ;;  %2826 = vmatprep.subr.bf16.mxu1 %v1635_v12  ;;  %v1502_v13 = vadd.f32 %v2764_v16, %v2570_v10  ;;  %v3681_v15 = vpop.f32.mrf.mxu1  ;;  %v1640_v10 = vpack.c.bf16 %v1186_v9, %v3565_v3 }
 0x19f   :  { %2814 = vmatprep.mubr.bf16.mxu0 %v4072_v37  ;;  %2827 = vmatpush3.bf16.xpose.msra.mxu1 %v1635_v12  ;;  %v1493_v60 = vpop.f32.mrf.mxu0 }
 0x1a0   :  { %2828 = vmatprep.subr.bf16.mxu1 %v1634_v8  ;;  %v1494_v31 = vadd.f32 %v2564_v5, %v1493_v60  ;;  %v3688_v47 = vpop.f32.mrf.mxu1 }
 0x1a1   :  { %v2765_v53 = vpop.f32.mrf.mxu0 }
 0x1a2   :  { %v1505_v40 = vadd.f32 %v2765_v53, %v2573_v57  ;;  %v2586_v5 = vpop.f32.mrf.mxu1 }
 0x1a3   :  { %v1496_v39 = vpop.f32.mrf.mxu0 }
 0x1a4   :  { %v3685_v12 = vpack.c.bf16 %v1505_v40, %v1502_v13  ;;  %v1497_v63 = vadd.f32 %v2567_v44, %v1496_v39  ;;  %v1196_v44 = vadd.f32 %v3550_v50, %v3573_v35  ;;  %v2587_v3 = vpop.f32.mrf.mxu1 }
 0x1a5   :  { %v3690_v33 = vpop.f32.mrf.mxu0  ;;  %v2588_v21 = vadd.f32 %v2587_v3, %v2586_v5 }
 0x1a6   :  { %2815 = vmatmul.mubr.bf16.gmra.mxu0 %v4073_v36  ;;  %v3695_v46 = vpack.c.bf16 %v1497_v63, %v1494_v31  ;;  %v2589_v57 = vpop.f32.mrf.mxu1  ;;  %v1641_v61 = vpack.c.bf16 %v1196_v44, %v3571_v14  ;;  %v4075_v14 = vpack.c.bf16 %v3583_v56, %v3581_v43 }
 0x1a7   :  { %2818 = vmatprep.mubr.bf16.mxu0 %v1640_v10  ;;  %2829 = vmatpush3.bf16.xpose.msra.mxu1 %v1634_v8  ;;  %v3697_v26 = vpop.f32.mrf.mxu0  ;;  %v4074_v8 = vpack.c.bf16 %v3577_v29, %v3575_v23 }
 0x1a8   :  { %2830 = vmatprep.subr.bf16.mxu1 %v1633_v7  ;;  %v2590_v54 = vpop.f32.mrf.mxu1 }
 0x1a9   :  { %v3701_v45 = vpop.f32.mrf.mxu0 }
 0x1aa   :  { %v2592_v4 = vpop.f32.mrf.mxu1 }
 0x1ab   :  { %v3703_v28 = vpop.f32.mrf.mxu0 }
 0x1ac   :  { %v2593_v50 = vpop.f32.mrf.mxu1 }
 0x1ad   :  { %v2772_v6 = vpop.f32.mrf.mxu0 }
 0x1ae   :  { %2819 = vmatmul.mubr.bf16.gmra.mxu0 %v1641_v61  ;;  %v2595_v18 = vpop.f32.mrf.mxu1 }
 0x1af   :  { %2822 = vmatprep.mubr.bf16.mxu0 %v4074_v8  ;;  %2831 = vmatpush3.bf16.xpose.msra.mxu1 %v1633_v7  ;;  %v1525_v16 = vpop.f32.mrf.mxu0  ;;  %v2594_v7 = vadd.f32 %v2593_v50, %v2592_v4 }
 0x1b0   :  { %2832 = vmatprep.subr.bf16.mxu1 %v3628_v41  ;;  %v2596_v60 = vpop.f32.mrf.mxu1 }
 0x1b1   :  { %v2773_v35 = vpop.f32.mrf.mxu0  ;;  %v2597_v36 = vadd.f32 %v2596_v60, %v2595_v18 }
 0x1b2   :  { %v2598_v13 = vpop.f32.mrf.mxu1 }
 0x1b3   :  { %v1528_v37 = vpop.f32.mrf.mxu0 }
 0x1b4   :  { %v2599_v23 = vpop.f32.mrf.mxu1 }
 0x1b5   :  { %v2776_v9 = vpop.f32.mrf.mxu0  ;;  %v2600_v43 = vadd.f32 %v2599_v23, %v2598_v13  ;;  %v2591_v13 = vadd.f32 %v2590_v54, %v2589_v57  ;;  %v1534_v23 = vadd.f32 %v2772_v6, %v2594_v7 }
 0x1b6   :  { %2823 = vmatmul.mubr.bf16.gmra.mxu0 %v4075_v14  ;;  %v2601_v29 = vpop.f32.mrf.mxu1 }
 0x1b7   :  { %2833 = vmatpush3.bf16.xpose.msra.mxu1 %v3628_v41  ;;  %v1541_v53 = vpop.f32.mrf.mxu0  ;;  %v1529_v5 = vadd.f32 %v2591_v13, %v1528_v37 }
 0x1b8   :  { %2834 = vmatprep.subr.bf16.mxu1 %v3618_v38  ;;  %v2602_v24 = vpop.f32.mrf.mxu1  ;;  %v1542_v61 = vadd.f32 %v2600_v43, %v1541_v53  ;;  %v1526_v53 = vadd.f32 %v2588_v21, %v1525_v16  ;;  %v2579_v21 = vadd.f32 %v3664_v42, %v3659_v34 }
 0x1b9   :  { %v2777_v31 = vpop.f32.mrf.mxu0  ;;  %v2603_v56 = vadd.f32 %v2602_v24, %v2601_v29  ;;  %v1537_v24 = vadd.f32 %v2773_v35, %v2597_v36 }
 0x1ba   :  { %v2604_v40 = vpop.f32.mrf.mxu1  ;;  %v1656_v6 = vpack.c.bf16 %v1529_v5, %v1526_v53 }
 0x1bb   :  { %v1544_v39 = vpop.f32.mrf.mxu0 }
 0x1bc   :  { %v2605_v48 = vpop.f32.mrf.mxu1  ;;  %v1545_v8 = vadd.f32 %v2603_v56, %v1544_v39 }
 0x1bd   :  { %v2606_v63 = vadd.f32 %v2605_v48, %v2604_v40  ;;  %v2780_v41 = vpop.f32.mrf.mxu0 }
 0x1be   :  { %v2607_v10 = vpop.f32.mrf.mxu1  ;;  %v1658_v40 = vpack.c.bf16 %v1545_v8, %v1542_v61 }
 0x1bf   :  { %2835 = vmatpush3.bf16.xpose.msra.mxu1 %v3618_v38  ;;  %v1550_v14 = vadd.f32 %v2776_v9, %v2606_v63  ;;  %v1557_v38 = vpop.f32.mrf.mxu0  ;;  %v2582_v9 = vadd.f32 %v3678_v2, %v3674_v49  ;;  %v2576_v49 = vadd.f32 %v3657_v52, %v3653_v30  ;;  %v1513_v30 = vadd.f32 %v2579_v21, %v3703_v28 }
 0x1c0   :  { %2836 = vmatprep.subr.bf16.mxu1 %v3606_v25  ;;  %v2608_v44 = vpop.f32.mrf.mxu1 }
 0x1c1   :  { %v2609_v11 = vadd.f32 %v2608_v44, %v2607_v10  ;;  %v2781_v18 = vpop.f32.mrf.mxu0  ;;  %v1518_v2 = vadd.f32 %v3690_v33, %v2582_v9  ;;  %v1510_v37 = vadd.f32 %v2576_v49, %v3697_v26  ;;  %v4077_v10 = vpack.c.bf16 %v3608_v27, %v3601_v51  ;;  %v4085_v9 = vld [vmem:[#allocation16_spill] sm:$0xff] }
 0x1c2   :  { %v2610_v22 = vpop.f32.mrf.mxu1 }
 0x1c3   :  { %v1553_v58 = vadd.f32 %v2777_v31, %v2609_v11  ;;  %v1657_v11 = vpack.c.bf16 %v1537_v24, %v1534_v23  ;;  %v1654_v56 = vpack.c.bf16 %v1513_v30, %v1510_v37 }
 0x1c4   :  { %v2611_v29 = vpop.f32.mrf.mxu1 }
 0x1c5   :  { %v2612_v4 = vadd.f32 %v2611_v29, %v2610_v22  ;;  %v1659_v50 = vpack.c.bf16 %v1553_v58, %v1550_v14  ;;  %v1560_v22 = vpop.f32.mrf.mxu0 }
 0x1c6   :  { %v2613_v60 = vpop.f32.mrf.mxu1 }
 0x1c7   :  { %2837 = vmatpush3.bf16.xpose.msra.mxu1 %v3606_v25  ;;  %2858 = vmatprep.subr.bf16.mxu0 %v1659_v50  ;;  %v2585_v25 = vadd.f32 %v3688_v47, %v3681_v15  ;;  %v1558_v3 = vadd.f32 %v2612_v4, %v1557_v38  ;;  %v3738_v48 = vpop.f32.mrf.mxu0 }
 0x1c8   :  { %2838 = vmatprep.subr.bf16.mxu1 %v3593_v17  ;;  %v2614_v39 = vpop.f32.mrf.mxu1  ;;  %2859 = vmatpush3.bf16.msra.mxu0 %v1659_v50 }
 0x1c9   :  { %v2615_v57 = vadd.f32 %v2614_v39, %v2613_v60  ;;  %2860 = vmatprep.subr.bf16.mxu0 %v1658_v40  ;;  %v1521_v47 = vadd.f32 %v3701_v45, %v2585_v25  ;;  %v3746_v28 = vpop.f32.mrf.mxu0  ;;  %v4086_v25 = vld [vmem:[#allocation15_spill] sm:$0xff] }
 0x1ca   :  { %v2616_v58 = vpop.f32.mrf.mxu1 }
 0x1cb   :  { %v1561_v54 = vadd.f32 %v2615_v57, %v1560_v22  ;;  %v1655_v52 = vpack.c.bf16 %v1521_v47, %v1518_v2  ;;  %v3756_v36 = vpop.f32.mrf.mxu0 }
 0x1cc   :  { %v2617_v15 = vpop.f32.mrf.mxu1  ;;  %2861 = vmatpush3.bf16.msra.mxu0 %v1658_v40 }
 0x1cd   :  { %v3731_v16 = vpack.c.bf16 %v1561_v54, %v1558_v3  ;;  %2862 = vmatprep.subr.bf16.mxu0 %v1657_v11  ;;  %v3759_v8 = vpop.f32.mrf.mxu0 }
 0x1ce   :  { %v2619_v35 = vpop.f32.mrf.mxu1 }
 0x1cf   :  { %2839 = vmatpush3.bf16.xpose.msra.mxu1 %v3593_v17  ;;  %v2618_v17 = vadd.f32 %v2617_v15, %v2616_v58  ;;  %v2788_v27 = vpop.f32.mrf.mxu0 }
 0x1d0   :  { %2840 = vmatprep.subr.bf16.mxu1 %v3589_v32  ;;  %v2620_v31 = vpop.f32.mrf.mxu1  ;;  %2863 = vmatpush3.bf16.msra.mxu0 %v1657_v11 }
 0x1d1   :  { %v1566_v34 = vadd.f32 %v2780_v41, %v2618_v17  ;;  %v2621_v42 = vadd.f32 %v2620_v31, %v2619_v35  ;;  %2864 = vmatprep.subr.bf16.mxu0 %v1656_v6  ;;  %v1589_v23 = vpop.f32.mrf.mxu0 }
 0x1d2   :  { %v3736_v33 = vpop.f32.mrf.mxu1 }
 0x1d3   :  { %v1569_v45 = vadd.f32 %v2781_v18, %v2621_v42  ;;  %v2789_v50 = vpop.f32.mrf.mxu0 }
 0x1d4   :  { %v3740_v43 = vpop.f32.mrf.mxu1  ;;  %2865 = vmatpush3.bf16.msra.mxu0 %v1656_v6 }
 0x1d5   :  { %v3742_v26 = vpack.c.bf16 %v1569_v45, %v1566_v34  ;;  %2866 = vmatprep.subr.bf16.mxu0 %v1655_v52  ;;  %v1592_v18 = vpop.f32.mrf.mxu0 }
 0x1d6   :  { %v3744_v63 = vpop.f32.mrf.mxu1 }
 0x1d7   :  { %2841 = vmatpush3.bf16.xpose.msra.mxu1 %v3589_v32  ;;  %v4076_v32 = vpack.c.bf16 %v3595_v20, %v3591_v55  ;;  %v4078_v55 = vpack.c.bf16 %v3620_v0, %v3615_v62  ;;  %v4079_v20 = vpack.c.bf16 %v3630_v1, %v3625_v59  ;;  %v4082_v62 = vld [vmem:[#allocation14_spill] sm:$0xff]  ;;  %v4083_v0 = vld [vmem:[#allocation13_spill] sm:$0xff]  ;;  %v2792_v39 = vpop.f32.mrf.mxu0 }
 0x1d8   :  { %v3748_v41 = vpop.f32.mrf.mxu1  ;;  %2867 = vmatpush3.bf16.msra.mxu0 %v1655_v52  ;;  %v4084_v40 = vpack.c.bf16 %v4082_v62, %v4083_v0 }
 0x1d9   :  { %2868 = vmatprep.subr.bf16.mxu0 %v1654_v56 }
 0x1da   :  { %v2628_v7 = vpop.f32.mrf.mxu1 }
 0x1dc   :  { %v2629_v44 = vpop.f32.mrf.mxu1  ;;  %2869 = vmatpush3.bf16.msra.mxu0 %v1654_v56 }
 0x1dd   :  { %2870 = vmatprep.subr.bf16.mxu0 %v3685_v12 }
 0x1de   :  { %2843 = vmatmul.mubr.bf16.vlgmr.msra.gmra.mxu1 %v4076_v32  ;;  %v2631_v61 = vpop.f32.mrf.mxu1 }
 0x1df   :  { %2846 = vmatprep.mubr.bf16.mxu1 %v4077_v10 }
 0x1e0   :  { %v2632_v14 = vpop.f32.mrf.mxu1  ;;  %2871 = vmatpush3.bf16.msra.mxu0 %v3685_v12  ;;  %v4080_v12 = vld [vmem:[#allocation12_spill] sm:$0xff] }
 0x1e1   :  { %2872 = vmatprep.subr.bf16.mxu0 %v3695_v46  ;;  %v4081_v24 = vpack.c.bf16 %v3640_v19, %v4080_v12  ;;  %v1605_v19 = vpop.f32.mrf.mxu0 }
 0x1e2   :  { %v2634_v51 = vpop.f32.mrf.mxu1 }
 0x1e3   :  { %v2793_v22 = vpop.f32.mrf.mxu0 }
 0x1e4   :  { %v2635_v38 = vpop.f32.mrf.mxu1  ;;  %2873 = vmatpush3.bf16.msra.mxu0 %v3695_v46  ;;  %v4087_v46 = vpack.c.bf16 %v4085_v9, %v4086_v25 }
 0x1e5   :  { %v1608_v2 = vpop.f32.mrf.mxu0  ;;  %v2636_v34 = vadd.f32 %v2635_v38, %v2634_v51  ;;  %v2624_v51 = vadd.f32 %v3740_v43, %v3736_v33 }
 0x1e6   :  { %2847 = vmatmul.mubr.bf16.gmra.mxu1 %v4078_v55  ;;  %v2637_v13 = vpop.f32.mrf.mxu1  ;;  %v2630_v55 = vadd.f32 %v2629_v44, %v2628_v7 }
 0x1e7   :  { %2850 = vmatprep.mubr.bf16.mxu1 %v4079_v20  ;;  %v2633_v20 = vadd.f32 %v2632_v14, %v2631_v61  ;;  %v1590_v12 = vadd.f32 %v2636_v34, %v1589_v23  ;;  %v1574_v61 = vadd.f32 %v2624_v51, %v3746_v28 }
 0x1e8   :  { %v2638_v29 = vpop.f32.mrf.mxu1  ;;  %v1582_v38 = vadd.f32 %v3738_v48, %v2630_v55  ;;  %v45_v48 = vlaneseq }
 0x1e9   :  { %v2639_v42 = vadd.f32 %v2638_v29, %v2637_v13  ;;  %v1585_v7 = vadd.f32 %v3756_v36, %v2633_v20  ;;  %v3306_v13 = vmov -1e+30  }
 0x1ea   :  { %v2640_v4 = vpop.f32.mrf.mxu1 }
 0x1eb   :  { %v3802_v33 = vpack.c.bf16 %v1585_v7, %v1582_v38 }
 0x1ec   :  { %v2641_v59 = vpop.f32.mrf.mxu1 }
 0x1ed   :  { %v2642_v47 = vadd.f32 %v2641_v59, %v2640_v4 }
 0x1ee   :  { %2851 = vmatmul.mubr.bf16.gmra.mxu1 %v4081_v24  ;;  %v2643_v1 = vpop.f32.mrf.mxu1  ;;  %v1593_v24 = vadd.f32 %v2639_v42, %v1592_v18 }
 0x1ef   :  { %2854 = vmatprep.mubr.bf16.mxu1 %v4084_v40  ;;  %v1598_v45 = vadd.f32 %v2788_v27, %v2642_v47  ;;  %v2627_v27 = vadd.f32 %v3748_v41, %v3744_v63  ;;  %v3816_v63 = vshrl.u32 %v45_v48, 7  ;;  %v3819_v41 = vand.u32 127, %v45_v48 }
 0x1f0   :  { %v2644_v60 = vpop.f32.mrf.mxu1  ;;  %v3796_v44 = vpack.c.bf16 %v1593_v24, %v1590_v12 }
 0x1f1   :  { %v2645_v6 = vadd.f32 %v2644_v60, %v2643_v1  ;;  %v1577_v14 = vadd.f32 %v2627_v27, %v3759_v8  ;;  %v48_v28 = vadd.s32 16, %v3816_v63  ;;  %v49_v36 = vadd.s32 24, %v3816_v63 }
 0x1f2   :  { %v2646_v53 = vpop.f32.mrf.mxu1  ;;  %vm64_vm1 = vcmp.le.s32.totalorder %v3819_v41, %v3816_v63  ;;  %v47_v8 = vadd.s32 8, %v3816_v63  ;;  %v52_v4 = vadd.s32 48, %v3816_v63  ;;  %v53_v18 = vadd.s32 56, %v3816_v63 }
 0x1f3   :  { %v1601_v56 = vadd.f32 %v2789_v50, %v2645_v6  ;;  %v3806_v43 = vpack.c.bf16 %v1577_v14, %v1574_v61  ;;  %vm66_vm0 = vcmp.le.s32.totalorder %v3819_v41, %v48_v28  ;;  %vm67_vm2 = vcmp.le.s32.totalorder %v3819_v41, %v49_v36 }
 0x1f4   :  { %v2647_v11 = vpop.f32.mrf.mxu1  ;;  %v3827_v23 = vsel %vm66_vm0, 0.0, %v3306_v13  ;;  %v3831_v0 = vsel %vm64_vm1, 0.0, %v3306_v13  ;;  %vm65_vm3 = vcmp.le.s32.totalorder %v3819_v41, %v47_v8  ;;  %v3839_v59 = vsel %vm67_vm2, 0.0, %v3306_v13 }
 0x1f5   :  { %v2648_v54 = vadd.f32 %v2647_v11, %v2646_v53  ;;  %v3786_v62 = vpack.c.bf16 %v1601_v56, %v1598_v45  ;;  %v3847_v9 = vsel %vm65_vm3, 0.0, %v3306_v13  ;;  %vm70_vm4 = vcmp.le.s32.totalorder %v3819_v41, %v52_v4 }
 0x1f6   :  { %2855 = vmatmul.mubr.bf16.gmra.mxu1 %v4087_v46  ;;  %v2649_v5 = vpop.f32.mrf.mxu1  ;;  %v50_v46 = vadd.s32 32, %v3816_v63  ;;  %vm71_vm5 = vcmp.le.s32.totalorder %v3819_v41, %v53_v18  ;;  %v51_v11 = vadd.s32 40, %v3816_v63  ;;  %v61_v56 = vadd.s32 120, %v3816_v63 }
 0x1f7   :  { %v1606_v35 = vadd.f32 %v2648_v54, %v1605_v19  ;;  %v57_v54 = vadd.s32 88, %v3816_v63  ;;  %v58_v24 = vadd.s32 96, %v3816_v63  ;;  %v59_v7 = vadd.s32 104, %v3816_v63 }
 0x1f8   :  { %v2650_v3 = vpop.f32.mrf.mxu1  ;;  %vm68_vm6 = vcmp.le.s32.totalorder %v3819_v41, %v50_v46  ;;  %vm69_vm7 = vcmp.le.s32.totalorder %v3819_v41, %v51_v11  ;;  %vm79_vm13 = vcmp.le.s32.totalorder %v3819_v41, %v61_v56 }
 0x1f9   :  { %v2651_v49 = vadd.f32 %v2650_v3, %v2649_v5  ;;  %v3862_v5 = vsel %vm70_vm4, 0.0, %v3306_v13  ;;  %v56_v3 = vadd.s32 80, %v3816_v63  ;;  %v3885_v47 = vsel %vm69_vm7, 0.0, %v3306_v13 }
 0x1fa   :  { %v2652_v57 = vpop.f32.mrf.mxu1  ;;  %vm75_vm9 = vcmp.le.s32.totalorder %v3819_v41, %v57_v54  ;;  %vm76_vm14 = vcmp.le.s32.totalorder %v3819_v41, %v58_v24  ;;  %v95_v36 = vsel %vm79_vm13, 0.0, %v3306_v13  ;;  %vm77_vm15 = vcmp.le.s32.totalorder %v3819_v41, %v59_v7 }
 0x1fb   :  { %v1609_v37 = vadd.f32 %v2651_v49, %v1608_v2  ;;  %v3876_v49 = vsel %vm68_vm6, 0.0, %v3306_v13  ;;  %vm74_vm8 = vcmp.le.s32.totalorder %v3819_v41, %v56_v3  ;;  %v3903_v42 = vsel %vm75_vm9, 0.0, %v3306_v13 }
 0x1fc   :  { %v2653_v58 = vpop.f32.mrf.mxu1 }
 0x1fd   :  { %v2654_v21 = vadd.f32 %v2653_v58, %v2652_v57  ;;  %v3779_v32 = vpack.c.bf16 %v1609_v37, %v1606_v35  ;;  %v55_v35 = vadd.s32 72, %v3816_v63  ;;  %v3894_v37 = vsel %vm74_vm8, 0.0, %v3306_v13 }
 0x1fe   :  { %v2655_v15 = vpop.f32.mrf.mxu1 }
 0x1ff   :  { %v1614_v31 = vadd.f32 %v2792_v39, %v2654_v21  ;;  %vm73_vm11 = vcmp.le.s32.totalorder %v3819_v41, %v55_v35 }
 0x200   :  { %v2656_v17 = vpop.f32.mrf.mxu1  ;;  %v89_v51 = vsel %vm73_vm11, 0.0, %v3306_v13 }
 0x201   :  { %v2657_v52 = vadd.f32 %v2656_v17, %v2655_v15  ;;  %v54_v15 = vadd.s32 64, %v3816_v63 }
 0x203   :  { %v1617_v30 = vadd.f32 %v2793_v22, %v2657_v52  ;;  %v3868_v22 = vsel %vm71_vm5, 0.0, %v3306_v13  ;;  %vm72_vm10 = vcmp.le.s32.totalorder %v3819_v41, %v54_v15 }
 0x204   :  { %v88_v55 = vsel %vm72_vm10, 0.0, %v3306_v13 }
 0x205   :  { %v3781_v10 = vpack.c.bf16 %v1617_v30, %v1614_v31  ;;  %v60_v30 = vadd.s32 112, %v3816_v63  ;;  %v92_v63 = vsel %vm76_vm14, 0.0, %v3306_v13 }
 0x207   :  { %2922 = vmatprep.subr.bf16.mxu1 %v3781_v10  ;;  %2890 = vmatprep.subr.bf16.mxu0 %v3781_v10  ;;  %vm78_vm12 = vcmp.le.s32.totalorder %v3819_v41, %v60_v30 }
 0x208   :  { %2930 = vmatpush3.bf16.msra.mxu1 %v3781_v10  ;;  %v3925_v61 = vsel %vm78_vm12, 0.0, %v3306_v13 }
 0x209   :  { %2923 = vmatprep.subr.bf16.mxu1 %v3779_v32 }
 0x20c   :  { %2931 = vmatpush3.bf16.msra.mxu1 %v3779_v32 }
 0x20d   :  { %2924 = vmatprep.subr.bf16.mxu1 %v3786_v62 }
 0x210   :  { %2932 = vmatpush3.bf16.msra.mxu1 %v3786_v62 }
 0x211   :  { %2925 = vmatprep.subr.bf16.mxu1 %v3796_v44 }
 0x214   :  { %2933 = vmatpush3.bf16.msra.mxu1 %v3796_v44 }
 0x215   :  { %2926 = vmatprep.subr.bf16.mxu1 %v3802_v33 }
 0x218   :  { %2934 = vmatpush3.bf16.msra.mxu1 %v3802_v33 }
 0x219   :  { %2927 = vmatprep.subr.bf16.mxu1 %v3806_v43 }
 0x21c   :  { %2935 = vmatpush3.bf16.msra.mxu1 %v3806_v43 }
 0x21d   :  { %2928 = vmatprep.subr.bf16.mxu1 %v3742_v26 }
 0x220   :  { %2936 = vmatpush3.bf16.msra.mxu1 %v3742_v26 }
 0x221   :  { %2929 = vmatprep.subr.bf16.mxu1 %v3731_v16 }
 0x224   :  { %2937 = vmatpush3.bf16.msra.mxu1 %v3731_v16 }
 0x25e   :  { %v2812_v29 = vpop.f32.mrf.mxu0 }
 0x25f   :  { %v3834_v40 = vadd.f32 %v2812_v29, %v3827_v23 }
 0x260   :  { %v1718_v50 = vpop.f32.mrf.mxu0 }
 0x261   :  { %v3842_v1 = vadd.f32 %v1718_v50, %v3831_v0  ;;  %1882 = vmax.xlane.f32.xlu1 %v3834_v40  ;;  %v93_v50 = vsel %vm77_vm15, 0.0, %v3306_v13 }
 0x262   :  { %v2813_v60 = vpop.f32.mrf.mxu0 }
 0x263   :  { %v3850_v25 = vadd.f32 %v2813_v60, %v3839_v59  ;;  %1878 = vmax.xlane.f32.xlu0 %v3842_v1 }
 0x264   :  { %v1721_v53 = vpop.f32.mrf.mxu0 }
 0x265   :  { %v3856_v39 = vadd.f32 %v1721_v53, %v3847_v9  ;;  %1884 = vmax.xlane.f32.xlu1 %v3850_v25 }
 0x266   :  { %v2816_v19 = vpop.f32.mrf.mxu0 }
 0x267   :  { %1880 = vmax.xlane.f32.xlu0 %v3856_v39  ;;  %v3871_v58 = vadd.f32 %v2816_v19, %v3862_v5 }
 0x268   :  { %v1734_v57 = vpop.f32.mrf.mxu0 }
 0x269   :  { %v3888_v17 = vadd.f32 %v1734_v57, %v3876_v49 }
 0x26a   :  { %v2817_v21 = vpop.f32.mrf.mxu0 }
 0x26b   :  { %v3879_v2 = vadd.f32 %v2817_v21, %v3868_v22  ;;  %1890 = vmax.xlane.f32.xlu0 %v3871_v58 }
 0x26c   :  { %v1737_v6 = vpop.f32.mrf.mxu0 }
 0x26d   :  { %1892 = vmax.xlane.f32.xlu1 %v3879_v2  ;;  %v3897_v52 = vadd.f32 %v1737_v6, %v3885_v47 }
 0x26e   :  { %v2820_v31 = vpop.f32.mrf.mxu0 }
 0x26f   :  { %1886 = vmax.xlane.f32.xlu0 %v3888_v17  ;;  %v3906_v45 = vadd.f32 %v2820_v31, %v3894_v37 }
 0x270   :  { %v1750_v34 = vpop.f32.mrf.mxu0 }
 0x271   :  { %1888 = vmax.xlane.f32.xlu1 %v3897_v52  ;;  %v3919_v38 = vadd.f32 %v1750_v34, %v88_v55 }
 0x272   :  { %v2821_v20 = vpop.f32.mrf.mxu0 }
 0x273   :  { %v3913_v12 = vadd.f32 %v2821_v20, %v3903_v42  ;;  %1898 = vmax.xlane.f32.xlu0 %v3906_v45 }
 0x274   :  { %v1753_v27 = vpop.f32.mrf.mxu0 }
 0x275   :  { %1900 = vmax.xlane.f32.xlu1 %v3913_v12  ;;  %v3927_v48 = vadd.f32 %v1753_v27, %v89_v51 }
 0x276   :  { %v2824_v14 = vpop.f32.mrf.mxu0 }
 0x277   :  { %1894 = vmax.xlane.f32.xlu0 %v3919_v38  ;;  %v3933_v8 = vadd.f32 %v2824_v14, %v3925_v61 }
 0x278   :  { %v1766_v28 = vpop.f32.mrf.mxu0 }
 0x279   :  { %1896 = vmax.xlane.f32.xlu1 %v3927_v48  ;;  %v3942_v60 = vadd.f32 %v1766_v28, %v92_v63 }
 0x27a   :  { %v2825_v29 = vpop.f32.mrf.mxu0 }
 0x27b   :  { %v3938_v4 = vadd.f32 %v2825_v29, %v95_v36  ;;  %1906 = vmax.xlane.f32.xlu0 %v3933_v8 }
 0x27c   :  { %v1769_v18 = vpop.f32.mrf.mxu0 }
 0x27d   :  { %1908 = vmax.xlane.f32.xlu1 %v3938_v4  ;;  %v3945_v46 = vadd.f32 %v1769_v18, %v93_v50 }
 0x27f   :  { %1902 = vmax.xlane.f32.xlu0 %v3942_v60 }
 0x281   :  { %1904 = vmax.xlane.f32.xlu1 %v3945_v46 }
 0x29e   :  { %v2844_v41 = vpop.f32.mrf.mxu1 }
 0x29f   :  { %v3950_v53 = vadd.f32 %v2844_v41, %v3827_v23 }
 0x2a0   :  { %v1815_v11 = vpop.f32.mrf.mxu1 }
 0x2a1   :  { %1914 = vmax.xlane.f32.xlu0 %v3950_v53  ;;  %v3954_v13 = vadd.f32 %v1815_v11, %v3831_v0 }
 0x2a2   :  { %v2845_v19 = vpop.f32.mrf.mxu1 }
 0x2a3   :  { %v3957_v3 = vadd.f32 %v2845_v19, %v3839_v59 }
 0x2a4   :  { %v1818_v57 = vpop.f32.mrf.mxu1 }
 0x2a5   :  { %1916 = vmax.xlane.f32.xlu1 %v3957_v3  ;;  %1910 = vmax.xlane.f32.xlu0 %v3954_v13  ;;  %v3962_v21 = vadd.f32 %v1818_v57, %v3847_v9 }
 0x2a6   :  { %v2848_v54 = vpop.f32.mrf.mxu1 }
 0x2a8   :  { %v1831_v23 = vpop.f32.mrf.mxu1 }
 0x2a9   :  { %v3965_v15 = vadd.f32 %v1831_v23, %v3876_v49  ;;  %1912 = vmax.xlane.f32.xlu1 %v3962_v21 }
 0x2aa   :  { %v2849_v0 = vpop.f32.mrf.mxu1 }
 0x2ab   :  { %1918 = vmax.xlane.f32.xlu0 %v3965_v15 }
 0x2ac   :  { %v1834_v59 = vpop.f32.mrf.mxu1 }
 0x2ad   :  { %v3970_v6 = vadd.f32 %v1834_v59, %v3885_v47 }
 0x2ae   :  { %v2852_v35 = vpop.f32.mrf.mxu1 }
 0x2af   :  { %v3973_v31 = vadd.f32 %v2852_v35, %v3894_v37  ;;  %1920 = vmax.xlane.f32.xlu1 %v3970_v6  ;;  %v3985_v37 = vadd.f32 %v2848_v54, %v3862_v5 }
 0x2b0   :  { %v1847_v9 = vpop.f32.mrf.mxu1 }
 0x2b1   :  { %1930 = vmax.xlane.f32.xlu0 %v3973_v31  ;;  %v3977_v30 = vadd.f32 %v1847_v9, %v88_v55 }
 0x2b2   :  { %v2853_v49 = vpop.f32.mrf.mxu1 }
 0x2b3   :  { %v3980_v34 = vadd.f32 %v2853_v49, %v3903_v42  ;;  %v3992_v42 = vadd.f32 %v2849_v0, %v3868_v22 }
 0x2b4   :  { %v1850_v56 = vpop.f32.mrf.mxu1 }
 0x2b5   :  { %1932 = vmax.xlane.f32.xlu1 %v3980_v34  ;;  %1926 = vmax.xlane.f32.xlu0 %v3977_v30  ;;  %v3987_v20 = vadd.f32 %v1850_v56, %v89_v51 }
 0x2b6   :  { %v2856_v47 = vpop.f32.mrf.mxu1 }
 0x2b7   :  { %v3999_v5 = vadd.f32 %v2856_v47, %v3925_v61 }
 0x2b8   :  { %v1863_v24 = vpop.f32.mrf.mxu1 }
 0x2b9   :  { %1928 = vmax.xlane.f32.xlu1 %v3987_v20  ;;  %1922 = vmax.xlane.f32.xlu0 %v3985_v37  ;;  %v3994_v27 = vadd.f32 %v1863_v24, %v92_v63 }
 0x2ba   :  { %v2857_v55 = vpop.f32.mrf.mxu1 }
 0x2bb   :  { %v4005_v14 = vadd.f32 %v2857_v55, %v95_v36 }
 0x2bc   :  { %v1866_v7 = vpop.f32.mrf.mxu1 }
 0x2bd   :  { %1924 = vmax.xlane.f32.xlu1 %v3992_v42  ;;  %1934 = vmax.xlane.f32.xlu0 %v3994_v27  ;;  %v4001_v51 = vadd.f32 %v1866_v7, %v93_v50 }
 0x2c1   :  { %1936 = vmax.xlane.f32.xlu1 %v4001_v51  ;;  %1938 = vmax.xlane.f32.xlu0 %v3999_v5 }
 0x2c5   :  { %1940 = vmax.xlane.f32.xlu1 %v4005_v14 }
 0x2ea   :  { %v1883_v22 = vpop.xlane.xlu1 %1882 }
 0x2eb   :  { %v1944_v28 = vsub.f32 %v3834_v40, %v1883_v22 }
 0x2ec   :  { %v1879_v63 = vpop.xlane.xlu0 %1878 }
 0x2ed   :  { %v1978_v29 = vmul.f32 1.442695, %v1944_v28  ;;  %v1942_v18 = vsub.f32 %v3842_v1, %v1879_v63 }
 0x2ee   :  { %v1885_v41 = vpop.xlane.xlu1 %1884 }
 0x2ef   :  { %3107 = vpow2.f32 %v1978_v29  ;;  %v1974_v61 = vmul.f32 1.442695, %v1942_v18  ;;  %v1945_v50 = vsub.f32 %v3850_v25, %v1885_v41 }
 0x2f0   :  { %v1881_v11 = vpop.xlane.xlu0 %1880 }
 0x2f1   :  { %v1980_v19 = vmul.f32 1.442695, %v1945_v50  ;;  %v1943_v57 = vsub.f32 %v3856_v39, %v1881_v11  ;;  %3109 = vpow2.f32 %v1974_v61 }
 0x2f3   :  { %3111 = vpow2.f32 %v1980_v19  ;;  %v1976_v36 = vmul.f32 1.442695, %v1943_v57 }
 0x2f4   :  { %v1891_v54 = vpop.xlane.xlu0 %1890 }
 0x2f5   :  { %3113 = vpow2.f32 %v1976_v36  ;;  %v1948_v40 = vsub.f32 %v3871_v58, %v1891_v54 }
 0x2f6   :  { %v1893_v23 = vpop.xlane.xlu1 %1892 }
 0x2f7   :  { %v1986_v0 = vmul.f32 1.442695, %v1948_v40  ;;  %v1949_v1 = vsub.f32 %v3879_v2, %v1893_v23 }
 0x2f8   :  { %v1887_v59 = vpop.xlane.xlu0 %1886 }
 0x2f9   :  { %3115 = vpow2.f32 %v1986_v0  ;;  %v1988_v35 = vmul.f32 1.442695, %v1949_v1  ;;  %v1946_v25 = vsub.f32 %v3888_v17, %v1887_v59 }
 0x2fa   :  { %v1889_v9 = vpop.xlane.xlu1 %1888 }
 0x2fb   :  { %3117 = vpow2.f32 %v1988_v35  ;;  %v1982_v49 = vmul.f32 1.442695, %v1946_v25  ;;  %v1947_v39 = vsub.f32 %v3897_v52, %v1889_v9 }
 0x2fc   :  { %v3108_v56 = vpop.eup %3107  ;;  %v1899_v47 = vpop.xlane.xlu0 %1898 }
 0x2fd   :  { %3119 = vpow2.f32 %v1982_v49  ;;  %v1984_v24 = vmul.f32 1.442695, %v1947_v39  ;;  %v1952_v58 = vsub.f32 %v3906_v45, %v1899_v47  ;;  %2042 = vadd.xlane.f32.xlu0 %v3108_v56 }
 0x2fe   :  { %v1901_v55 = vpop.xlane.xlu1 %1900  ;;  %v3110_v7 = vpop.eup %3109 }
 0x2ff   :  { %3121 = vpow2.f32 %v1984_v24  ;;  %v1994_v2 = vmul.f32 1.442695, %v1952_v58  ;;  %v1953_v22 = vsub.f32 %v3913_v12, %v1901_v55 }
 0x300   :  { %v3112_v28 = vpop.eup %3111  ;;  %v1895_v17 = vpop.xlane.xlu0 %1894 }
 0x301   :  { %3123 = vpow2.f32 %v1994_v2  ;;  %v1996_v63 = vmul.f32 1.442695, %v1953_v22  ;;  %v1950_v29 = vsub.f32 %v3919_v38, %v1895_v17  ;;  %2044 = vadd.xlane.f32.xlu1 %v3112_v28  ;;  %2038 = vadd.xlane.f32.xlu0 %v3110_v7  ;;  %v2103_v50 = vpack.c.bf16 %v3112_v28, %v3108_v56 }
 0x302   :  { %v3114_v52 = vpop.eup %3113  ;;  %v1897_v18 = vpop.xlane.xlu1 %1896 }
 0x303   :  { %3125 = vpow2.f32 %v1996_v63  ;;  %v1990_v41 = vmul.f32 1.442695, %v1950_v29  ;;  %v1951_v45 = vsub.f32 %v3927_v48, %v1897_v18  ;;  %v2102_v61 = vpack.c.bf16 %v3114_v52, %v3110_v7 }
 0x304   :  { %v1907_v11 = vpop.xlane.xlu0 %1906 }
 0x305   :  { %3127 = vpow2.f32 %v1990_v41  ;;  %v1992_v19 = vmul.f32 1.442695, %v1951_v45  ;;  %v1956_v12 = vsub.f32 %v3933_v8, %v1907_v11  ;;  %2874 = vmatprep.mubr.bf16.mxu0 %v2102_v61  ;;  %2040 = vadd.xlane.f32.xlu1 %v3114_v52 }
 0x306   :  { %v3116_v57 = vpop.eup %3115  ;;  %v1909_v36 = vpop.xlane.xlu1 %1908  ;;  %2875 = vmatmul.mubr.bf16.vlgmr.msra.gmra.mxu0 %v2103_v50 }
 0x307   :  { %3129 = vpow2.f32 %v1992_v19  ;;  %v2002_v38 = vmul.f32 1.442695, %v1956_v12  ;;  %v1957_v54 = vsub.f32 %v3938_v4, %v1909_v36  ;;  %2891 = vmatpush3.bf16.msra.mxu0 %v3781_v10  ;;  %2050 = vadd.xlane.f32.xlu0 %v3116_v57 }
 0x308   :  { %v3118_v48 = vpop.eup %3117  ;;  %2892 = vmatprep.subr.bf16.mxu0 %v3779_v32  ;;  %v1903_v40 = vpop.xlane.xlu0 %1902 }
 0x309   :  { %3131 = vpow2.f32 %v2002_v38  ;;  %v2004_v23 = vmul.f32 1.442695, %v1957_v54  ;;  %v1954_v8 = vsub.f32 %v3942_v60, %v1903_v40  ;;  %2052 = vadd.xlane.f32.xlu1 %v3118_v48  ;;  %v2105_v60 = vpack.c.bf16 %v3118_v48, %v3116_v57 }
 0x30a   :  { %v3120_v0 = vpop.eup %3119  ;;  %v1905_v1 = vpop.xlane.xlu1 %1904 }
 0x30b   :  { %3133 = vpow2.f32 %v2004_v23  ;;  %v1998_v59 = vmul.f32 1.442695, %v1954_v8  ;;  %v1955_v35 = vsub.f32 %v3945_v46, %v1905_v1  ;;  %2893 = vmatpush3.bf16.msra.mxu0 %v3779_v32  ;;  %2046 = vadd.xlane.f32.xlu0 %v3120_v0 }
 0x30c   :  { %v3122_v10 = vpop.eup %3121  ;;  %2894 = vmatprep.subr.bf16.mxu0 %v3786_v62 }
 0x30d   :  { %3135 = vpow2.f32 %v1998_v59  ;;  %v2000_v4 = vmul.f32 1.442695, %v1955_v35  ;;  %2048 = vadd.xlane.f32.xlu1 %v3122_v10  ;;  %v2104_v25 = vpack.c.bf16 %v3122_v10, %v3120_v0 }
 0x30e   :  { %v3124_v9 = vpop.eup %3123 }
 0x30f   :  { %3137 = vpow2.f32 %v2000_v4  ;;  %2895 = vmatpush3.bf16.msra.mxu0 %v3786_v62  ;;  %2878 = vmatprep.mubr.bf16.mxu0 %v2104_v25 }
 0x310   :  { %v3126_v49 = vpop.eup %3125  ;;  %2896 = vmatprep.subr.bf16.mxu0 %v3796_v44  ;;  %2058 = vadd.xlane.f32.xlu0 %v3124_v9 }
 0x311   :  { %2879 = vmatmul.mubr.bf16.gmra.mxu0 %v2105_v60  ;;  %2060 = vadd.xlane.f32.xlu1 %v3126_v49  ;;  %v2107_v62 = vpack.c.bf16 %v3126_v49, %v3124_v9 }
 0x312   :  { %v3128_v32 = vpop.eup %3127 }
 0x313   :  { %2897 = vmatpush3.bf16.msra.mxu0 %v3796_v44 }
 0x314   :  { %v3130_v46 = vpop.eup %3129  ;;  %2898 = vmatprep.subr.bf16.mxu0 %v3802_v33  ;;  %2054 = vadd.xlane.f32.xlu0 %v3128_v32 }
 0x315   :  { %2056 = vadd.xlane.f32.xlu1 %v3130_v46  ;;  %v2106_v39 = vpack.c.bf16 %v3130_v46, %v3128_v32 }
 0x316   :  { %v3132_v56 = vpop.eup %3131 }
 0x317   :  { %2899 = vmatpush3.bf16.msra.mxu0 %v3802_v33  ;;  %2882 = vmatprep.mubr.bf16.mxu0 %v2106_v39 }
 0x318   :  { %v3134_v47 = vpop.eup %3133  ;;  %2900 = vmatprep.subr.bf16.mxu0 %v3806_v43  ;;  %2066 = vadd.xlane.f32.xlu0 %v3132_v56 }
 0x319   :  { %2883 = vmatmul.mubr.bf16.gmra.mxu0 %v2107_v62  ;;  %2068 = vadd.xlane.f32.xlu1 %v3134_v47  ;;  %v2109_v33 = vpack.c.bf16 %v3134_v47, %v3132_v56 }
 0x31a   :  { %v3136_v24 = vpop.eup %3135 }
 0x31b   :  { %2901 = vmatpush3.bf16.msra.mxu0 %v3806_v43 }
 0x31c   :  { %v3138_v44 = vpop.eup %3137  ;;  %2902 = vmatprep.subr.bf16.mxu0 %v3742_v26  ;;  %2062 = vadd.xlane.f32.xlu0 %v3136_v24 }
 0x31d   :  { %2064 = vadd.xlane.f32.xlu1 %v3138_v44  ;;  %v2108_v58 = vpack.c.bf16 %v3138_v44, %v3136_v24 }
 0x31f   :  { %2903 = vmatpush3.bf16.msra.mxu0 %v3742_v26  ;;  %2886 = vmatprep.mubr.bf16.mxu0 %v2108_v58 }
 0x320   :  { %2904 = vmatprep.subr.bf16.mxu0 %v3731_v16 }
 0x321   :  { %2887 = vmatmul.mubr.bf16.gmra.mxu0 %v2109_v33 }
 0x323   :  { %2905 = vmatpush3.bf16.msra.mxu0 %v3731_v16 }
 0x32a   :  { %v1915_v55 = vpop.xlane.xlu0 %1914 }
 0x32b   :  { %v1960_v7 = vsub.f32 %v3950_v53, %v1915_v55 }
 0x32d   :  { %v2010_v2 = vmul.f32 1.442695, %v1960_v7 }
 0x32e   :  { %v1917_v43 = vpop.xlane.xlu1 %1916  ;;  %v1911_v22 = vpop.xlane.xlu0 %1910 }
 0x32f   :  { %3139 = vpow2.f32 %v2010_v2  ;;  %v1961_v28 = vsub.f32 %v3957_v3, %v1917_v43  ;;  %v1958_v17 = vsub.f32 %v3954_v13, %v1911_v22 }
 0x331   :  { %v2012_v63 = vmul.f32 1.442695, %v1961_v28  ;;  %v2006_v26 = vmul.f32 1.442695, %v1958_v17 }
 0x332   :  { %v1913_v29 = vpop.xlane.xlu1 %1912 }
 0x333   :  { %3141 = vpow2.f32 %v2012_v63  ;;  %v1959_v52 = vsub.f32 %v3962_v21, %v1913_v29 }
 0x334   :  { %3143 = vpow2.f32 %v2006_v26  ;;  %v1919_v18 = vpop.xlane.xlu0 %1918 }
 0x335   :  { %v2008_v16 = vmul.f32 1.442695, %v1959_v52  ;;  %v1962_v41 = vsub.f32 %v3965_v15, %v1919_v18 }
 0x337   :  { %3145 = vpow2.f32 %v2008_v16  ;;  %v2014_v53 = vmul.f32 1.442695, %v1962_v41 }
 0x338   :  { %v1921_v45 = vpop.xlane.xlu1 %1920 }
 0x339   :  { %v1963_v61 = vsub.f32 %v3970_v6, %v1921_v45  ;;  %3147 = vpow2.f32 %v2014_v53 }
 0x33a   :  { %v1931_v50 = vpop.xlane.xlu0 %1930 }
 0x33b   :  { %v2016_v3 = vmul.f32 1.442695, %v1963_v61  ;;  %v1968_v13 = vsub.f32 %v3973_v31, %v1931_v50 }
 0x33c   :  { %v3140_v11 = vpop.eup %3139 }
 0x33d   :  { %3149 = vpow2.f32 %v2016_v3  ;;  %2074 = vadd.xlane.f32.xlu0 %v3140_v11  ;;  %v2026_v36 = vmul.f32 1.442695, %v1968_v13 }
 0x33e   :  { %v1933_v19 = vpop.xlane.xlu1 %1932  ;;  %v1927_v21 = vpop.xlane.xlu0 %1926 }
 0x33f   :  { %v1969_v12 = vsub.f32 %v3980_v34, %v1933_v19  ;;  %v1966_v57 = vsub.f32 %v3977_v30, %v1927_v21  ;;  %3151 = vpow2.f32 %v2026_v36 }
 0x340   :  { %v3142_v15 = vpop.eup %3141 }
 0x341   :  { %v3144_v38 = vpop.eup %3143  ;;  %v2028_v54 = vmul.f32 1.442695, %v1969_v12  ;;  %2076 = vadd.xlane.f32.xlu1 %v3142_v15  ;;  %v2022_v6 = vmul.f32 1.442695, %v1966_v57  ;;  %v2111_v1 = vpack.c.bf16 %v3142_v15, %v3140_v11 }
 0x342   :  { %2070 = vadd.xlane.f32.xlu0 %v3144_v38  ;;  %v1929_v48 = vpop.xlane.xlu1 %1928  ;;  %v1923_v40 = vpop.xlane.xlu0 %1922 }
 0x343   :  { %v1967_v23 = vsub.f32 %v3987_v20, %v1929_v48  ;;  %v1964_v31 = vsub.f32 %v3985_v37, %v1923_v40  ;;  %3153 = vpow2.f32 %v2028_v54 }
 0x344   :  { %v3146_v8 = vpop.eup %3145  ;;  %3155 = vpow2.f32 %v2022_v6 }
 0x345   :  { %v2024_v0 = vmul.f32 1.442695, %v1967_v23  ;;  %v2018_v34 = vmul.f32 1.442695, %v1964_v31  ;;  %2072 = vadd.xlane.f32.xlu1 %v3146_v8  ;;  %v2110_v30 = vpack.c.bf16 %v3146_v8, %v3144_v38 }
 0x346   :  { %v1925_v59 = vpop.xlane.xlu1 %1924  ;;  %v1935_v35 = vpop.xlane.xlu0 %1934 }
 0x347   :  { %3157 = vpow2.f32 %v2024_v0  ;;  %v1965_v10 = vsub.f32 %v3992_v42, %v1925_v59  ;;  %v1970_v4 = vsub.f32 %v3994_v27, %v1935_v35  ;;  %2906 = vmatprep.mubr.bf16.mxu0 %v2110_v30  ;;  %v3148_v37 = vpop.eup %3147 }
 0x348   :  { %3159 = vpow2.f32 %v2018_v34  ;;  %2907 = vmatmul.mubr.bf16.vlgmr.msra.gmra.mxu0 %v2111_v1 }
 0x349   :  { %v2020_v20 = vmul.f32 1.442695, %v1965_v10  ;;  %v2030_v9 = vmul.f32 1.442695, %v1970_v4 }
 0x34a   :  { %v3150_v25 = vpop.eup %3149  ;;  %v1937_v60 = vpop.xlane.xlu1 %1936 }
 0x34b   :  { %v1939_v49 = vpop.xlane.xlu0 %1938  ;;  %3161 = vpow2.f32 %v2020_v20  ;;  %v1971_v32 = vsub.f32 %v4001_v51, %v1937_v60  ;;  %v2112_v39 = vpack.c.bf16 %v3150_v25, %v3148_v37 }
 0x34c   :  { %v1972_v46 = vsub.f32 %v3999_v5, %v1939_v49  ;;  %3163 = vpow2.f32 %v2030_v9  ;;  %v3152_v47 = vpop.eup %3151 }
 0x34d   :  { %v2032_v56 = vmul.f32 1.442695, %v1971_v32  ;;  %2910 = vmatprep.mubr.bf16.mxu0 %v2112_v39 }
 0x34e   :  { %v2034_v42 = vmul.f32 1.442695, %v1972_v46  ;;  %v1941_v27 = vpop.xlane.xlu1 %1940 }
 0x34f   :  { %3165 = vpow2.f32 %v2032_v56  ;;  %v1973_v62 = vsub.f32 %v4005_v14, %v1941_v27 }
 0x350   :  { %v3154_v44 = vpop.eup %3153  ;;  %3167 = vpow2.f32 %v2034_v42 }
 0x351   :  { %v2036_v24 = vmul.f32 1.442695, %v1973_v62  ;;  %v3156_v58 = vpop.eup %3155  ;;  %v2115_v7 = vpack.c.bf16 %v3154_v44, %v3152_v47 }
 0x353   :  { %3169 = vpow2.f32 %v2036_v24 }
 0x354   :  { %v3158_v33 = vpop.eup %3157 }
 0x355   :  { %v3160_v55 = vpop.eup %3159  ;;  %v2114_v51 = vpack.c.bf16 %v3158_v33, %v3156_v58 }
 0x356   :  { %2082 = vadd.xlane.f32.xlu0 %v3160_v55 }
 0x357   :  { %2914 = vmatprep.mubr.bf16.mxu1 %v2114_v51 }
 0x358   :  { %v3162_v5 = vpop.eup %3161  ;;  %2915 = vmatmul.mubr.bf16.vlgmr.msra.gmra.mxu1 %v2115_v7 }
 0x359   :  { %2084 = vadd.xlane.f32.xlu1 %v3162_v5  ;;  %v2113_v2 = vpack.c.bf16 %v3162_v5, %v3160_v55  ;;  %v3164_v43 = vpop.eup %3163 }
 0x35a   :  { %2078 = vadd.xlane.f32.xlu0 %v3148_v37 }
 0x35b   :  { %2911 = vmatmul.mubr.bf16.gmra.mxu0 %v2113_v2 }
 0x35c   :  { %v3166_v14 = vpop.eup %3165 }
 0x35d   :  { %2080 = vadd.xlane.f32.xlu1 %v3150_v25  ;;  %v2116_v22 = vpack.c.bf16 %v3166_v14, %v3164_v43  ;;  %v3168_v28 = vpop.eup %3167 }
 0x35e   :  { %2090 = vadd.xlane.f32.xlu0 %v3152_v47 }
 0x35f   :  { %2918 = vmatprep.mubr.bf16.mxu1 %v2116_v22 }
 0x360   :  { %v3170_v17 = vpop.eup %3169 }
 0x361   :  { %2092 = vadd.xlane.f32.xlu1 %v3154_v44  ;;  %v2117_v63 = vpack.c.bf16 %v3170_v17, %v3168_v28 }
 0x362   :  { %2086 = vadd.xlane.f32.xlu0 %v3156_v58 }
 0x363   :  { %2919 = vmatmul.mubr.bf16.gmra.mxu1 %v2117_v63 }
 0x365   :  { %2088 = vadd.xlane.f32.xlu1 %v3158_v33 }
 0x366   :  { %2094 = vadd.xlane.f32.xlu0 %v3164_v43 }
 0x369   :  { %2096 = vadd.xlane.f32.xlu1 %v3166_v14 }
 0x36a   :  { %2098 = vadd.xlane.f32.xlu0 %v3168_v28 }
 0x36d   :  { %2100 = vadd.xlane.f32.xlu1 %v3170_v17 }
 0x386   :  { %v2043_v26 = vpop.xlane.xlu0 %2042 }
 0x387   :  { %3171 = vrcp.f32 %v2043_v26 }
 0x38a   :  { %v2045_v29 = vpop.xlane.xlu1 %2044  ;;  %v2039_v52 = vpop.xlane.xlu0 %2038 }
 0x38b   :  { %3173 = vrcp.f32 %v2039_v52 }
 0x38c   :  { %3175 = vrcp.f32 %v2045_v29 }
 0x38e   :  { %v2041_v18 = vpop.xlane.xlu1 %2040 }
 0x38f   :  { %3177 = vrcp.f32 %v2041_v18 }
 0x390   :  { %v2051_v16 = vpop.xlane.xlu0 %2050 }
 0x391   :  { %3179 = vrcp.f32 %v2051_v16 }
 0x392   :  { %v2053_v41 = vpop.xlane.xlu1 %2052 }
 0x394   :  { %v2047_v53 = vpop.xlane.xlu0 %2046  ;;  %v3172_v3 = vpop.eup %3171 }
 0x395   :  { %3181 = vrcp.f32 %v2047_v53 }
 0x396   :  { %v2049_v45 = vpop.xlane.xlu1 %2048  ;;  %3183 = vrcp.f32 %v2053_v41 }
 0x397   :  { %3185 = vrcp.f32 %v2049_v45 }
 0x398   :  { %v3174_v21 = vpop.eup %3173 }
 0x399   :  { %v2059_v61 = vpop.xlane.xlu0 %2058  ;;  %v3176_v15 = vpop.eup %3175 }
 0x39a   :  { %v2061_v50 = vpop.xlane.xlu1 %2060  ;;  %3187 = vrcp.f32 %v2059_v61 }
 0x39c   :  { %v3178_v6 = vpop.eup %3177 }
 0x39d   :  { %v2055_v13 = vpop.xlane.xlu0 %2054 }
 0x39e   :  { %v2057_v38 = vpop.xlane.xlu1 %2056  ;;  %3189 = vrcp.f32 %v2055_v13  ;;  %v3180_v31 = vpop.eup %3179 }
 0x39f   :  { %3191 = vrcp.f32 %v2061_v50 }
 0x3a0   :  { %3193 = vrcp.f32 %v2057_v38 }
 0x3a1   :  { %v2067_v40 = vpop.xlane.xlu0 %2066 }
 0x3a2   :  { %v2069_v8 = vpop.xlane.xlu1 %2068  ;;  %v3182_v30 = vpop.eup %3181  ;;  %3195 = vrcp.f32 %v2067_v40 }
 0x3a3   :  { %v3184_v10 = vpop.eup %3183 }
 0x3a4   :  { %v3186_v20 = vpop.eup %3185 }
 0x3a5   :  { %v2063_v1 = vpop.xlane.xlu0 %2062 }
 0x3a6   :  { %3197 = vrcp.f32 %v2063_v1  ;;  %v2065_v25 = vpop.xlane.xlu1 %2064 }
 0x3a7   :  { %3199 = vrcp.f32 %v2069_v8  ;;  %v3188_v49 = vpop.eup %3187 }
 0x3a8   :  { %3201 = vrcp.f32 %v2065_v25 }
 0x3ab   :  { %v3190_v39 = vpop.eup %3189 }
 0x3ac   :  { %v3192_v27 = vpop.eup %3191 }
 0x3ad   :  { %v3194_v24 = vpop.eup %3193 }
 0x3af   :  { %v3196_v33 = vpop.eup %3195 }
 0x3b3   :  { %v3198_v7 = vpop.eup %3197 }
 0x3b4   :  { %v3200_v43 = vpop.eup %3199 }
 0x3b5   :  { %v3202_v28 = vpop.eup %3201 }
 0x3c6   :  { %v2876_v11 = vpop.f32.mrf.mxu0  ;;  %v2075_v26 = vpop.xlane.xlu0 %2074 }
 0x3c7   :  { %v2346_v19 = vmul.f32 %v3172_v3, %v2876_v11  ;;  %3203 = vrcp.f32 %v2075_v26 }
 0x3c8   :  { %v2152_v12 = vpop.f32.mrf.mxu0 }
 0x3c9   :  { %2378 = vst [vmem:[#allocation8 + $0x10] sm:$0xff] %v2346_v19  ;;  %v2344_v57 = vmul.f32 %v3174_v21, %v2152_v12 }
 0x3ca   :  { %v2877_v36 = vpop.f32.mrf.mxu0  ;;  %v2077_v29 = vpop.xlane.xlu1 %2076 }
 0x3cb   :  { %2376 = vst [vmem:[#allocation8] sm:$0xff] %v2344_v57  ;;  %v2347_v54 = vmul.f32 %v3176_v15, %v2877_v36  ;;  %v2071_v52 = vpop.xlane.xlu0 %2070 }
 0x3cc   :  { %v2155_v48 = vpop.f32.mrf.mxu0  ;;  %3205 = vrcp.f32 %v2071_v52 }
 0x3cd   :  { %2379 = vst [vmem:[#allocation8 + $0x18] sm:$0xff] %v2347_v54  ;;  %v2345_v23 = vmul.f32 %v3178_v6, %v2155_v48  ;;  %3207 = vrcp.f32 %v2077_v29 }
 0x3ce   :  { %v2073_v18 = vpop.xlane.xlu1 %2072 }
 0x3cf   :  { %2377 = vst [vmem:[#allocation8 + $0x8] sm:$0xff] %v2345_v23  ;;  %3209 = vrcp.f32 %v2073_v18 }
 0x3d1   :  { %v2880_v0 = vpop.f32.mrf.mxu0 }
 0x3d2   :  { %v2350_v34 = vmul.f32 %v3180_v31, %v2880_v0 }
 0x3d3   :  { %v2168_v59 = vpop.f32.mrf.mxu0 }
 0x3d4   :  { %2382 = vst [vmem:[#allocation8 + $0x30] sm:$0xff] %v2350_v34  ;;  %v2348_v35 = vmul.f32 %v3182_v30, %v2168_v59  ;;  %v3204_v11 = vpop.eup %3203 }
 0x3d5   :  { %v2881_v4 = vpop.f32.mrf.mxu0 }
 0x3d6   :  { %2380 = vst [vmem:[#allocation8 + $0x20] sm:$0xff] %v2348_v35  ;;  %v2351_v37 = vmul.f32 %v3184_v10, %v2881_v4 }
 0x3d7   :  { %v2171_v9 = vpop.f32.mrf.mxu0 }
 0x3d8   :  { %2383 = vst [vmem:[#allocation8 + $0x38] sm:$0xff] %v2351_v37  ;;  %v2349_v60 = vmul.f32 %v3186_v20, %v2171_v9 }
 0x3d9   :  { %v2884_v32 = vpop.f32.mrf.mxu0  ;;  %v3206_v21 = vpop.eup %3205 }
 0x3da   :  { %2381 = vst [vmem:[#allocation8 + $0x28] sm:$0xff] %v2349_v60  ;;  %v2354_v46 = vmul.f32 %v3188_v49, %v2884_v32  ;;  %v3208_v36 = vpop.eup %3207 }
 0x3db   :  { %v2184_v56 = vpop.f32.mrf.mxu0 }
 0x3dc   :  { %2386 = vst [vmem:[#allocation8 + $0x50] sm:$0xff] %v2354_v46  ;;  %v2352_v42 = vmul.f32 %v3190_v39, %v2184_v56  ;;  %v3210_v48 = vpop.eup %3209 }
 0x3dd   :  { %v2885_v62 = vpop.f32.mrf.mxu0 }
 0x3de   :  { %2384 = vst [vmem:[#allocation8 + $0x40] sm:$0xff] %v2352_v42  ;;  %v2355_v47 = vmul.f32 %v3192_v27, %v2885_v62 }
 0x3df   :  { %v2187_v44 = vpop.f32.mrf.mxu0  ;;  %v2083_v16 = vpop.xlane.xlu0 %2082 }
 0x3e0   :  { %2387 = vst [vmem:[#allocation8 + $0x58] sm:$0xff] %v2355_v47  ;;  %v2353_v58 = vmul.f32 %v3194_v24, %v2187_v44 }
 0x3e1   :  { %v2888_v55 = vpop.f32.mrf.mxu0 }
 0x3e2   :  { %2385 = vst [vmem:[#allocation8 + $0x48] sm:$0xff] %v2353_v58  ;;  %v2358_v51 = vmul.f32 %v3196_v33, %v2888_v55  ;;  %v2085_v41 = vpop.xlane.xlu1 %2084 }
 0x3e3   :  { %v2200_v5 = vpop.f32.mrf.mxu0  ;;  %v2079_v53 = vpop.xlane.xlu0 %2078 }
 0x3e4   :  { %2390 = vst [vmem:[#allocation8 + $0x70] sm:$0xff] %v2358_v51  ;;  %v2356_v2 = vmul.f32 %v3198_v7, %v2200_v5 }
 0x3e5   :  { %v2889_v14 = vpop.f32.mrf.mxu0 }
 0x3e6   :  { %2388 = vst [vmem:[#allocation8 + $0x60] sm:$0xff] %v2356_v2  ;;  %v2359_v22 = vmul.f32 %v3200_v43, %v2889_v14  ;;  %v2081_v45 = vpop.xlane.xlu1 %2080 }
 0x3e7   :  { %v2203_v17 = vpop.f32.mrf.mxu0  ;;  %v2091_v61 = vpop.xlane.xlu0 %2090 }
 0x3e8   :  { %2391 = vst [vmem:[#allocation8 + $0x78] sm:$0xff] %v2359_v22  ;;  %v2357_v63 = vmul.f32 %v3202_v28, %v2203_v17  ;;  %3211 = vrcp.f32 %v2091_v61 }
 0x3ea   :  { %2389 = vst [vmem:[#allocation8 + $0x68] sm:$0xff] %v2357_v63  ;;  %v2093_v50 = vpop.xlane.xlu1 %2092 }
 0x3eb   :  { %v2087_v3 = vpop.xlane.xlu0 %2086 }
 0x3ec   :  { %3213 = vrcp.f32 %v2087_v3 }
 0x3ed   :  { %3215 = vrcp.f32 %v2083_v16 }
 0x3ee   :  { %v2089_v57 = vpop.xlane.xlu1 %2088  ;;  %3217 = vrcp.f32 %v2093_v50 }
 0x3ef   :  { %v2095_v54 = vpop.xlane.xlu0 %2094  ;;  %3219 = vrcp.f32 %v2079_v53 }
 0x3f0   :  { %3221 = vrcp.f32 %v2089_v57 }
 0x3f1   :  { %3223 = vrcp.f32 %v2085_v41 }
 0x3f2   :  { %v2097_v31 = vpop.xlane.xlu1 %2096  ;;  %3225 = vrcp.f32 %v2081_v45 }
 0x3f3   :  { %v2099_v8 = vpop.xlane.xlu0 %2098 }
 0x3f4   :  { %3227 = vrcp.f32 %v2099_v8 }
 0x3f5   :  { %v3212_v34 = vpop.eup %3211  ;;  %3229 = vrcp.f32 %v2095_v54 }
 0x3f6   :  { %v2101_v0 = vpop.xlane.xlu1 %2100 }
 0x3f7   :  { %3231 = vrcp.f32 %v2101_v0 }
 0x3f8   :  { %3233 = vrcp.f32 %v2097_v31 }
 0x3f9   :  { %v3214_v59 = vpop.eup %3213 }
 0x3fa   :  { %v3216_v10 = vpop.eup %3215 }
 0x3fb   :  { %v3218_v20 = vpop.eup %3217 }
 0x3fc   :  { %v3220_v60 = vpop.eup %3219 }
 0x3fd   :  { %v3222_v46 = vpop.eup %3221 }
 0x3fe   :  { %v3224_v42 = vpop.eup %3223 }
 0x3ff   :  { %v3226_v24 = vpop.eup %3225 }
 0x401   :  { %v3228_v33 = vpop.eup %3227 }
 0x402   :  { %v3230_v7 = vpop.eup %3229 }
 0x404   :  { %v3232_v43 = vpop.eup %3231 }
 0x405   :  { %v3234_v28 = vpop.eup %3233 }
 0x408   :  { %v2908_v13 = vpop.f32.mrf.mxu0 }
 0x409   :  { %v2362_v19 = vmul.f32 %v3204_v11, %v2908_v13 }
 0x40a   :  { %v2249_v12 = vpop.f32.mrf.mxu0 }
 0x40b   :  { %2394 = vst [vmem:[#allocation8 + $0x90] sm:$0xff] %v2362_v19  ;;  %v2360_v15 = vmul.f32 %v3206_v21, %v2249_v12 }
 0x40c   :  { %v2909_v38 = vpop.f32.mrf.mxu0 }
 0x40d   :  { %2392 = vst [vmem:[#allocation8 + $0x80] sm:$0xff] %v2360_v15  ;;  %v2363_v6 = vmul.f32 %v3208_v36, %v2909_v38 }
 0x40e   :  { %v2252_v40 = vpop.f32.mrf.mxu0 }
 0x40f   :  { %2395 = vst [vmem:[#allocation8 + $0x98] sm:$0xff] %v2363_v6  ;;  %v2361_v23 = vmul.f32 %v3210_v48, %v2252_v40 }
 0x411   :  { %2393 = vst [vmem:[#allocation8 + $0x88] sm:$0xff] %v2361_v23 }
 0x418   :  { %v2916_v30 = vpop.f32.mrf.mxu1 }
 0x419   :  { %v2370_v1 = vmul.f32 %v3212_v34, %v2916_v30 }
 0x41a   :  { %v2281_v35 = vpop.f32.mrf.mxu1 }
 0x41b   :  { %2402 = vst [vmem:[#allocation8 + $0xd0] sm:$0xff] %v2370_v1  ;;  %v2368_v4 = vmul.f32 %v3214_v59, %v2281_v35  ;;  %v2912_v37 = vpop.f32.mrf.mxu0 }
 0x41c   :  { %v2366_v25 = vmul.f32 %v3216_v10, %v2912_v37  ;;  %v2917_v9 = vpop.f32.mrf.mxu1 }
 0x41d   :  { %2400 = vst [vmem:[#allocation8 + $0xc0] sm:$0xff] %v2368_v4  ;;  %v2371_v49 = vmul.f32 %v3218_v20, %v2917_v9  ;;  %v2265_v32 = vpop.f32.mrf.mxu0 }
 0x41e   :  { %2398 = vst [vmem:[#allocation8 + $0xb0] sm:$0xff] %v2366_v25  ;;  %v2364_v39 = vmul.f32 %v3220_v60, %v2265_v32  ;;  %v2284_v56 = vpop.f32.mrf.mxu1 }
 0x41f   :  { %2403 = vst [vmem:[#allocation8 + $0xd8] sm:$0xff] %v2371_v49  ;;  %v2369_v27 = vmul.f32 %v3222_v46, %v2284_v56  ;;  %v2913_v62 = vpop.f32.mrf.mxu0 }
 0x420   :  { %2396 = vst [vmem:[#allocation8 + $0xa0] sm:$0xff] %v2364_v39  ;;  %v2367_v47 = vmul.f32 %v3224_v42, %v2913_v62 }
 0x421   :  { %2401 = vst [vmem:[#allocation8 + $0xc8] sm:$0xff] %v2369_v27  ;;  %v2268_v44 = vpop.f32.mrf.mxu0 }
 0x422   :  { %2399 = vst [vmem:[#allocation8 + $0xb8] sm:$0xff] %v2367_v47  ;;  %v2365_v58 = vmul.f32 %v3226_v24, %v2268_v44 }
 0x423   :  { %v2920_v55 = vpop.f32.mrf.mxu1 }
 0x424   :  { %2397 = vst [vmem:[#allocation8 + $0xa8] sm:$0xff] %v2365_v58  ;;  %v2374_v51 = vmul.f32 %v3228_v33, %v2920_v55 }
 0x425   :  { %v2297_v5 = vpop.f32.mrf.mxu1 }
 0x426   :  { %2406 = vst [vmem:[#allocation8 + $0xf0] sm:$0xff] %v2374_v51  ;;  %v2372_v2 = vmul.f32 %v3230_v7, %v2297_v5 }
 0x427   :  { %v2921_v14 = vpop.f32.mrf.mxu1 }
 0x428   :  { %2404 = vst [vmem:[#allocation8 + $0xe0] sm:$0xff] %v2372_v2  ;;  %v2375_v22 = vmul.f32 %v3232_v43, %v2921_v14 }
 0x429   :  { %v2300_v17 = vpop.f32.mrf.mxu1 }
 0x42a   :  { %2407 = vst [vmem:[#allocation8 + $0xf8] sm:$0xff] %v2375_v22  ;;  %v2373_v63 = vmul.f32 %v3234_v28, %v2300_v17 }
 0x42c   :  { %2405 = vst [vmem:[#allocation8 + $0xe8] sm:$0xff] %v2373_v63 }
 0x42d   :  { %3286 = shalt.err (!%p3283_p0)
}
 0x42e   :  { %s3308_s22 = smov 128   ;;  %s3309_s23 = smov 8  }
 0x42f   :  { %2419 = dma.vmem_to_hbm [thread:$0]  %s2414_s1, 4096, %s4060_s2, [#allocation5], %s3308_s22, %s3308_s22, %s3309_s23  }
 0x430   :  { %3299 = dma.done.wait [#allocation5], 4096  }
 0x431   :  { %3300 = vsyncadd [#allocation5], 4294963200 }
 0x432   :  { %2423 = vsyncpa [#allocation4], 1 }
 0x433   :  { %2424 = vsyncpa [#allocation7], 1 }
 0x434   :  { %2425 = vsyncpa [#allocation5], 1 }

</bundles_post_ra>
